<compile_context>
chip_gen: v7x
topology: tpu7x:2x2x1
jax: 0.10.0
libtpu: 0.0.40
codegen_flags: <defaults>
</compile_context>

<pallas_src>
import functools
import math

import jax
import jax.numpy as jnp
from jax.experimental import pallas as pl
from jax.experimental.pallas import tpu as pltpu


_LN_EPS = 1e-5                       # torch.nn.LayerNorm default


def _vmem_limit_bytes():
    """Scoped-VMEM limit derived from the actual chip (v5e/v6e: ~100 MiB,
    v7x: ~48 MiB) instead of pinning a conservative constant everywhere."""
    try:
        cap = int(pltpu.get_tpu_info().vmem_capacity_bytes)
    except Exception:
        cap = 64 * 1024 * 1024
    return int(min(max(cap - 16 * 1024 * 1024, 32 * 1024 * 1024),
                   100 * 1024 * 1024))


_VMEM_LIMIT = _vmem_limit_bytes()


def _pick_tile(n, target):
    """Largest divisor of n that is <= target, preferring multiples of 8."""
    if n <= target:
        return n
    best = None
    for t in range(target, 0, -1):
        if n % t == 0:
            if t % 8 == 0:
                return t
            if best is None:
                best = t
    # TODO(synk): pad the sequence / add a masked tail tile instead of falling
    # back to tiny or whole-extent tiles when n has no friendly divisor.
    return best if best is not None else n


def _layer_norm_f32(x, g_ref, b_ref):
    # x: (S, D) float32; gamma/beta refs are (1, D)
    mean = jnp.mean(x, axis=-1, keepdims=True)
    var = jnp.mean(jnp.square(x - mean), axis=-1, keepdims=True)
    xn = (x - mean) * jax.lax.rsqrt(var + _LN_EPS)
    return xn * g_ref[0] + b_ref[0]


# ----------------------------------------------------------------------------
# Stage 1: (optional LayerNorm) + K/V projection, computed once per batch elem.
# ----------------------------------------------------------------------------
def _ln_kv_proj_kernel(ctx_ref, g_ref, b_ref, wk_ref, wv_ref, k_ref, v_ref,
                       *, apply_ln):
    c = ctx_ref[0].astype(jnp.float32)                      # (tkv, Dc)
    cn = _layer_norm_f32(c, g_ref, b_ref) if apply_ln else c
    cm = cn.astype(wk_ref.dtype)                            # bf16 MXU operands
    k_ref[0] = jnp.dot(cm, wk_ref[...],
                       preferred_element_type=jnp.float32).astype(k_ref.dtype)
    v_ref[0] = jnp.dot(cm, wv_ref[...],
                       preferred_element_type=jnp.float32).astype(v_ref.dtype)


def project_kv(ctx, gamma, beta, wk, wv, *, apply_ln, kv_tile=512):
    B, Sk, Dc = ctx.shape
    D = wk.shape[1]
    tkv = _pick_tile(Sk, kv_tile)
    kv_dtype = wk.dtype        # bf16 weights -> bf16 K/V (halves score/PV bytes)
    kern = functools.partial(_ln_kv_proj_kernel, apply_ln=apply_ln)
    return pl.pallas_call(
        kern,
        out_shape=(jax.ShapeDtypeStruct((B, Sk, D), kv_dtype),
                   jax.ShapeDtypeStruct((B, Sk, D), kv_dtype)),
        grid=(B, Sk // tkv),
        in_specs=[
            pl.BlockSpec((1, tkv, Dc), lambda b, s: (b, s, 0)),        # context
            pl.BlockSpec((1, gamma.shape[1]), lambda b, s: (0, 0)),    # ln gamma
            pl.BlockSpec((1, beta.shape[1]), lambda b, s: (0, 0)),     # ln beta
            pl.BlockSpec((Dc, D), lambda b, s: (0, 0)),                # wk
            pl.BlockSpec((Dc, D), lambda b, s: (0, 0)),                # wv
        ],
        out_specs=[pl.BlockSpec((1, tkv, D), lambda b, s: (b, s, 0)),
                   pl.BlockSpec((1, tkv, D), lambda b, s: (b, s, 0))],
        compiler_params=pltpu.CompilerParams(
            dimension_semantics=("parallel", "parallel"),
            vmem_limit_bytes=_VMEM_LIMIT),
    )(ctx, gamma, beta, wk, wv)


# ----------------------------------------------------------------------------
# Stage 2: fused LayerNorm + Q proj + flash attention + out-proj + residual.
# Grid: (batch, q-tile, kv-chunk["arbitrary"]).  K/V chunks are pipelined by
# BlockSpec; q / m / l / acc live in VMEM scratch across the kv sweep.
# ----------------------------------------------------------------------------
def _flash_attn_kernel(x_ref, k_ref, v_ref, g_ref, b_ref, wq_ref, wo_ref, bo_ref,
                       o_ref, q_sc, m_sc, l_sc, acc_sc, *, num_heads, head_dim):
    H, hd = num_heads, head_dim
    tq = x_ref.shape[1]
    D = x_ref.shape[2]
    kc = k_ref.shape[1]
    mxu_dt = wq_ref.dtype
    ki = pl.program_id(2)

    @pl.when(ki == 0)
    def _init():
        # LN + q projection computed ONCE per q-tile (not per kv chunk).
        xq = x_ref[0].astype(jnp.float32)                   # (tq, D) residual
        xn = _layer_norm_f32(xq, g_ref, b_ref)
        q = jnp.dot(xn.astype(mxu_dt), wq_ref[...],
                    preferred_element_type=jnp.float32)
        q = q * jnp.float32(1.0 / math.sqrt(hd))            # pre-scale by 1/sqrt(hd)
        q_sc[...] = q.reshape(tq, H, hd).astype(mxu_dt)
        m_sc[...] = jnp.full(m_sc.shape, -jnp.inf, dtype=jnp.float32)
        l_sc[...] = jnp.zeros(l_sc.shape, dtype=jnp.float32)
        acc_sc[...] = jnp.zeros(acc_sc.shape, dtype=jnp.float32)

    kh = k_ref[0].reshape(kc, H, hd)                         # bf16
    vh = v_ref[0].reshape(kc, H, hd)                         # bf16

    # batched-head contraction, bf16 operands, f32 accumulation
    s = jnp.einsum('qhd,khd->hqk', q_sc[...], kh,
                   preferred_element_type=jnp.float32)       # (H, tq, kc)
    m_new = jnp.maximum(m_sc[...], jnp.max(s, axis=-1, keepdims=True))
    alpha = jnp.exp(m_sc[...] - m_new)                       # (H, tq, 1)
    p = jnp.exp(s - m_new)                                   # (H, tq, kc)
    l_sc[...] = alpha * l_sc[...] + jnp.sum(p, axis=-1, keepdims=True)
    pv = jnp.einsum('hqk,khd->hqd', p.astype(mxu_dt), vh,
                    preferred_element_type=jnp.float32)      # (H, tq, hd)
    acc_sc[...] = alpha * acc_sc[...] + pv
    m_sc[...] = m_new

    @pl.when(ki == pl.num_programs(2) - 1)
    def _finalize():
        # approx reciprocal runs on the EUP slot (essentially free)
        acc = acc_sc[...] * pl.reciprocal(l_sc[...], approx=True)
        o = acc.transpose(1, 0, 2).reshape(tq, D)            # merge heads (once per q-tile)
        out = jnp.dot(o.astype(mxu_dt), wo_ref[...],
                      preferred_element_type=jnp.float32) + bo_ref[0]
        o_ref[0] = (out + x_ref[0].astype(jnp.float32)).astype(o_ref.dtype)


def fused_attention(x, ctx, gamma, beta, wq, wk, wv, wo, bo, num_heads,
                    *, ctx_is_self, q_tile=512, kv_chunk=512):
    B, S, D = x.shape
    Sk = ctx.shape[1]
    assert D % num_heads == 0
    head_dim = D // num_heads

    # K/V (with LN fused for self-attention) computed once per batch element.
    k, v = project_kv(ctx, gamma, beta, wk, wv, apply_ln=ctx_is_self)

    tq = _pick_tile(S, q_tile)
    kc = _pick_tile(Sk, kv_chunk)
    assert S % tq == 0 and Sk % kc == 0
    mxu_dt = wq.dtype

    kern = functools.partial(_flash_attn_kernel, num_heads=num_heads,
                             head_dim=head_dim)
    # TODO(synk): once validated on the target jax version, mark the
    # grid-invariant weight/bias specs with pipeline_mode=pl.Buffered(1) to
    # drop their second (unused) VMEM buffer.
    return pl.pallas_call(
        kern,
        out_shape=jax.ShapeDtypeStruct((B, S, D), x.dtype),
        grid=(B, S // tq, Sk // kc),
        in_specs=[
            pl.BlockSpec((1, tq, D), lambda b, qi, ki: (b, qi, 0)),   # x (residual + LN src)
            pl.BlockSpec((1, kc, D), lambda b, qi, ki: (b, ki, 0)),   # K chunk (pipelined)
            pl.BlockSpec((1, kc, D), lambda b, qi, ki: (b, ki, 0)),   # V chunk (pipelined)
            pl.BlockSpec((1, D), lambda b, qi, ki: (0, 0)),           # ln gamma
            pl.BlockSpec((1, D), lambda b, qi, ki: (0, 0)),           # ln beta
            pl.BlockSpec((D, D), lambda b, qi, ki: (0, 0)),           # wq
            pl.BlockSpec((D, D), lambda b, qi, ki: (0, 0)),           # wo
            pl.BlockSpec((1, D), lambda b, qi, ki: (0, 0)),           # bo
        ],
        out_specs=pl.BlockSpec((1, tq, D), lambda b, qi, ki: (b, qi, 0)),
        scratch_shapes=[
            pltpu.VMEM((tq, num_heads, head_dim), mxu_dt),        # cached scaled q
            pltpu.VMEM((num_heads, tq, 1), jnp.float32),          # running max
            pltpu.VMEM((num_heads, tq, 1), jnp.float32),          # running denom
            pltpu.VMEM((num_heads, tq, head_dim), jnp.float32),   # running numer
        ],
        compiler_params=pltpu.CompilerParams(
            dimension_semantics=("parallel", "parallel", "arbitrary"),
            vmem_limit_bytes=_VMEM_LIMIT),
    )(x, k, v, gamma, beta, wq, wo, bo)


# ----------------------------------------------------------------------------
# Stage 3: fused LayerNorm + GEGLU feed-forward + residual, with the GEGLU
# inner dimension tiled as a reduction grid axis (accumulate into f32 scratch).
# ----------------------------------------------------------------------------
def _ff_geglu_kernel(x_ref, g_ref, b_ref, w1h_ref, b1h_ref, w1g_ref, b1g_ref,
                     w2_ref, b2_ref, o_ref, xn_sc, acc_sc):
    ci = pl.program_id(2)
    mxu_dt = w1h_ref.dtype

    @pl.when(ci == 0)
    def _init():
        x = x_ref[0].astype(jnp.float32)
        xn_sc[...] = _layer_norm_f32(x, g_ref, b_ref).astype(mxu_dt)
        acc_sc[...] = jnp.zeros(acc_sc.shape, dtype=jnp.float32)

    xm = xn_sc[...]                                           # (ts, D) cached LN
    hidden = jnp.dot(xm, w1h_ref[...],
                     preferred_element_type=jnp.float32) + b1h_ref[0]
    gate = jnp.dot(xm, w1g_ref[...],
                   preferred_element_type=jnp.float32) + b1g_ref[0]
    # exact (erf-based) GELU, matching torch.nn.functional.gelu default
    gelu_gate = 0.5 * gate * (1.0 + jax.lax.erf(gate * jnp.float32(0.7071067811865476)))
    hg = (hidden * gelu_gate).astype(mxu_dt)                  # (ts, ic)
    acc_sc[...] += jnp.dot(hg, w2_ref[...], preferred_element_type=jnp.float32)

    @pl.when(ci == pl.num_programs(2) - 1)
    def _finalize():
        out = acc_sc[...] + b2_ref[0]
        o_ref[0] = (out + x_ref[0].astype(jnp.float32)).astype(o_ref.dtype)


def fused_feed_forward(x, gamma, beta, w1h, b1h, w1g, b1g, w2, b2,
                       *, s_tile=512, inner_tile=2048):
    B, S, D = x.shape
    inner = w1h.shape[1]
    ts = _pick_tile(S, s_tile)
    ic = _pick_tile(inner, inner_tile)
    assert S % ts == 0 and inner % ic == 0
    mxu_dt = w1h.dtype
    return pl.pallas_call(
        _ff_geglu_kernel,
        out_shape=jax.ShapeDtypeStruct((B, S, D), x.dtype),
        grid=(B, S // ts, inner // ic),
        in_specs=[
            pl.BlockSpec((1, ts, D), lambda b, si, ci: (b, si, 0)),
            pl.BlockSpec((1, D), lambda b, si, ci: (0, 0)),
            pl.BlockSpec((1, D), lambda b, si, ci: (0, 0)),
            pl.BlockSpec((D, ic), lambda b, si, ci: (0, ci)),      # w1h inner slab
            pl.BlockSpec((1, ic), lambda b, si, ci: (0, ci)),      # b1h inner slab
            pl.BlockSpec((D, ic), lambda b, si, ci: (0, ci)),      # w1g inner slab
            pl.BlockSpec((1, ic), lambda b, si, ci: (0, ci)),      # b1g inner slab
            pl.BlockSpec((ic, D), lambda b, si, ci: (ci, 0)),      # w2 inner slab
            pl.BlockSpec((1, D), lambda b, si, ci: (0, 0)),
        ],
        out_specs=pl.BlockSpec((1, ts, D), lambda b, si, ci: (b, si, 0)),
        scratch_shapes=[pltpu.VMEM((ts, D), mxu_dt),          # cached LN output
                        pltpu.VMEM((ts, D), jnp.float32)],    # f32 accumulator
        compiler_params=pltpu.CompilerParams(
            dimension_semantics=("parallel", "parallel", "arbitrary"),
            vmem_limit_bytes=_VMEM_LIMIT),
    )(x, gamma, beta, w1h, b1h, w1g, b1g, w2, b2)


# ----------------------------------------------------------------------------
# Full QuantBasicTransformerBlock forward (quantizers disabled: use_aq=False)
# ----------------------------------------------------------------------------
def quant_basic_transformer_block(x, encoder_hidden_states, params, num_heads):
    p = params
    # block 1: x = attn1(norm1(x)) + x        (self-attention)
    x = fused_attention(x, x, p["ln1_g"], p["ln1_b"],
                        p["a1_wq"], p["a1_wk"], p["a1_wv"], p["a1_wo"], p["a1_bo"],
                        num_heads, ctx_is_self=True)
    # block 2: x = attn2(norm2(x), ctx) + x   (cross-attention, or self if ctx None)
    if encoder_hidden_states is None:
        x = fused_attention(x, x, p["ln2_g"], p["ln2_b"],
                            p["a2_wq"], p["a2_wk"], p["a2_wv"], p["a2_wo"], p["a2_bo"],
                            num_heads, ctx_is_self=True)
    else:
        x = fused_attention(x, encoder_hidden_states, p["ln2_g"], p["ln2_b"],
                            p["a2_wq"], p["a2_wk"], p["a2_wv"], p["a2_wo"], p["a2_bo"],
                            num_heads, ctx_is_self=False)
    # block 3: x = ff(norm3(x)) + x           (GEGLU feed-forward)
    x = fused_feed_forward(x, p["ln3_g"], p["ln3_b"],
                           p["ff_w1h"], p["ff_b1h"], p["ff_w1g"], p["ff_b1g"],
                           p["ff_w2"], p["ff_b2"])
    return x
    # TODO(synk): UniformAffineQuantizer / T2ILogQuantizer paths are no-ops here
    # because the module sets attn*.use_aq = False in __init__ (StraightThrough);
    # dropout layers are identity in eval mode.


# ----------------------------------------------------------------------------
# Deterministic parameter init + example run
# ----------------------------------------------------------------------------
def init_params(key, dim, ctx_dim, ff_mult=4, weight_dtype=jnp.bfloat16):
    """Matmul weights in bf16 (halved HBM traffic / VMEM, ~2x MXU rate);
    LayerNorm params and biases kept in f32 (added post f32-accumulation)."""
    inner = ff_mult * dim
    keys = jax.random.split(key, 26)
    s = 0.05

    def w(k, shape):
        return (s * jax.random.normal(k, shape)).astype(weight_dtype)

    def b(k, shape):
        return (s * jax.random.normal(k, shape)).astype(jnp.float32)

    return {
        "ln1_g": (jnp.ones((1, dim)) + s * jax.random.normal(keys[0], (1, dim))).astype(jnp.float32),
        "ln1_b": b(keys[1], (1, dim)),
        "ln2_g": (jnp.ones((1, dim)) + s * jax.random.normal(keys[2], (1, dim))).astype(jnp.float32),
        "ln2_b": b(keys[3], (1, dim)),
        "ln3_g": (jnp.ones((1, dim)) + s * jax.random.normal(keys[4], (1, dim))).astype(jnp.float32),
        "ln3_b": b(keys[5], (1, dim)),
        # self-attention (q/k/v no bias, out-proj bias)
        "a1_wq": w(keys[6], (dim, dim)),
        "a1_wk": w(keys[7], (dim, dim)),
        "a1_wv": w(keys[8], (dim, dim)),
        "a1_wo": w(keys[9], (dim, dim)),
        "a1_bo": b(keys[10], (1, dim)),
        # cross-attention (context projected from ctx_dim)
        "a2_wq": w(keys[11], (dim, dim)),
        "a2_wk": w(keys[12], (ctx_dim, dim)),
        "a2_wv": w(keys[13], (ctx_dim, dim)),
        "a2_wo": w(keys[14], (dim, dim)),
        "a2_bo": b(keys[15], (1, dim)),
        # GEGLU feed-forward, proj split into hidden / gate halves
        "ff_w1h": w(keys[16], (dim, inner)),
        "ff_b1h": b(keys[17], (1, inner)),
        "ff_w1g": w(keys[18], (dim, inner)),
        "ff_b1g": b(keys[19], (1, inner)),
        "ff_w2": w(keys[20], (inner, dim)),
        "ff_b2": b(keys[21], (1, dim)),
    }


if __name__ == "__main__":
    # Small but layout-friendly shapes: D multiple of 128 (lane-dense outputs),
    # S big enough to exercise seq tiling and the kv-chunk grid axis.
    B, S, S_ENC, D, HEADS = 2, 512, 64, 128, 4

    key = jax.random.PRNGKey(0)
    kx, kctx, kp = jax.random.split(key, 3)
    x = jax.random.normal(kx, (B, S, D), dtype=jnp.float32)
    encoder_hidden_states = jax.random.normal(kctx, (B, S_ENC, D), dtype=jnp.float32)
    params = init_params(kp, D, ctx_dim=D)

    out = quant_basic_transformer_block(x, encoder_hidden_states, params, HEADS)
    out = jax.block_until_ready(out)
    assert out.shape == (B, S, D)
    assert bool(jnp.all(jnp.isfinite(out)))
    print("KERNEL_OK")
</pallas_src>

<mosaic_0001>
module attributes {stable_mosaic.version = 11 : i64} {
  func.func @_ln_kv_proj_kernel(%arg0: i32, %arg1: i32, %arg2: memref<1x512x128xf32, #tpu.memory_space<vmem>>, %arg3: memref<1x128xf32, #tpu.memory_space<vmem>>, %arg4: memref<1x128xf32, #tpu.memory_space<vmem>>, %arg5: memref<128x128xbf16, #tpu.memory_space<vmem>>, %arg6: memref<128x128xbf16, #tpu.memory_space<vmem>>, %arg7: memref<1x512x128xbf16, #tpu.memory_space<vmem>>, %arg8: memref<1x512x128xbf16, #tpu.memory_space<vmem>>) attributes {dimension_semantics = [#tpu.dimension_semantics<parallel>, #tpu.dimension_semantics<parallel>], iteration_bounds = array<i64: 2, 1>, scalar_prefetch = 0 : i64, scratch_operands = 0 : i64, tpu.core_type = #tpu.core_type<tc>, window_params = [{transform_indices = @transform_0, window_bounds = array<i64: 1, 512, 128>}, {pipeline_mode = #tpu.pipeline_mode<synchronous>, transform_indices = @transform_1, window_bounds = array<i64: 1, 128>}, {pipeline_mode = #tpu.pipeline_mode<synchronous>, transform_indices = @transform_2, window_bounds = array<i64: 1, 128>}, {pipeline_mode = #tpu.pipeline_mode<synchronous>, transform_indices = @transform_3, window_bounds = array<i64: 128, 128>}, {pipeline_mode = #tpu.pipeline_mode<synchronous>, transform_indices = @transform_4, window_bounds = array<i64: 128, 128>}, {transform_indices = @transform_5, window_bounds = array<i64: 1, 512, 128>}, {transform_indices = @transform_6, window_bounds = array<i64: 1, 512, 128>}]} {
    %c0 = arith.constant 0 : index
    %c0_0 = arith.constant 0 : index
    %c0_1 = arith.constant 0 : index
    %0 = vector.load %arg2[%c0, %c0_0, %c0_1] : memref<1x512x128xf32, #tpu.memory_space<vmem>>, vector<1x512x128xf32>
    %1 = vector.shape_cast %0 : vector<1x512x128xf32> to vector<512x128xf32>
    %cst = arith.constant dense<0.000000e+00> : vector<512xf32>
    %2 = vector.multi_reduction <add>, %1, %cst [1] : vector<512x128xf32> to vector<512xf32>
    %3 = vector.shape_cast %2 : vector<512xf32> to vector<512x1xf32>
    %cst_2 = arith.constant 1.280000e+02 : f32
    %4 = vector.broadcast %cst_2 : f32 to vector<512x1xf32>
    %5 = arith.divf %3, %4 : vector<512x1xf32>
    %6 = vector.broadcast %5 : vector<512x1xf32> to vector<512x128xf32>
    %7 = arith.subf %1, %6 : vector<512x128xf32>
    %8 = arith.mulf %7, %7 : vector<512x128xf32>
    %cst_3 = arith.constant dense<0.000000e+00> : vector<512xf32>
    %9 = vector.multi_reduction <add>, %8, %cst_3 [1] : vector<512x128xf32> to vector<512xf32>
    %10 = vector.shape_cast %9 : vector<512xf32> to vector<512x1xf32>
    %cst_4 = arith.constant 1.280000e+02 : f32
    %11 = vector.broadcast %cst_4 : f32 to vector<512x1xf32>
    %12 = arith.divf %10, %11 : vector<512x1xf32>
    %13 = vector.broadcast %5 : vector<512x1xf32> to vector<512x128xf32>
    %14 = arith.subf %1, %13 : vector<512x128xf32>
    %cst_5 = arith.constant 9.99999974E-6 : f32
    %15 = vector.broadcast %cst_5 : f32 to vector<512x1xf32>
    %16 = arith.addf %12, %15 : vector<512x1xf32>
    %17 = math.rsqrt %16 : vector<512x1xf32>
    %18 = vector.broadcast %17 : vector<512x1xf32> to vector<512x128xf32>
    %19 = arith.mulf %14, %18 : vector<512x128xf32>
    %c0_6 = arith.constant 0 : index
    %c0_7 = arith.constant 0 : index
    %20 = vector.load %arg3[%c0_6, %c0_7] : memref<1x128xf32, #tpu.memory_space<vmem>>, vector<1x128xf32>
    %21 = vector.shape_cast %20 : vector<1x128xf32> to vector<128xf32>
    %22 = vector.shape_cast %21 : vector<128xf32> to vector<1x128xf32>
    %23 = vector.broadcast %22 : vector<1x128xf32> to vector<512x128xf32>
    %24 = arith.mulf %19, %23 : vector<512x128xf32>
    %c0_8 = arith.constant 0 : index
    %c0_9 = arith.constant 0 : index
    %25 = vector.load %arg4[%c0_8, %c0_9] : memref<1x128xf32, #tpu.memory_space<vmem>>, vector<1x128xf32>
    %26 = vector.shape_cast %25 : vector<1x128xf32> to vector<128xf32>
    %27 = vector.shape_cast %26 : vector<128xf32> to vector<1x128xf32>
    %28 = vector.broadcast %27 : vector<1x128xf32> to vector<512x128xf32>
    %29 = arith.addf %24, %28 : vector<512x128xf32>
    %30 = arith.truncf %29 : vector<512x128xf32> to vector<512x128xbf16>
    %c0_10 = arith.constant 0 : index
    %c0_11 = arith.constant 0 : index
    %31 = vector.load %arg5[%c0_10, %c0_11] : memref<128x128xbf16, #tpu.memory_space<vmem>>, vector<128x128xbf16>
    %cst_12 = arith.constant dense<0.000000e+00> : vector<512x128xf32>
    %32 = tpu.matmul %30, %31, %cst_12 {dimension_numbers = #tpu.dot_dimension_numbers<[1], [0], [0], [1], [0, 0, 1, 1], [], []>} : vector<512x128xbf16>, vector<128x128xbf16>, vector<512x128xf32> -> vector<512x128xf32>
    %33 = arith.truncf %32 : vector<512x128xf32> to vector<512x128xbf16>
    %c0_13 = arith.constant 0 : index
    %c0_14 = arith.constant 0 : index
    %c0_15 = arith.constant 0 : index
    %34 = vector.load %arg7[%c0_13, %c0_14, %c0_15] : memref<1x512x128xbf16, #tpu.memory_space<vmem>>, vector<1x512x128xbf16>
    %35 = vector.shape_cast %34 : vector<1x512x128xbf16> to vector<512x128xbf16>
    %36 = vector.shape_cast %33 : vector<512x128xbf16> to vector<1x512x128xbf16>
    tpu.vector_store %arg7[%c0_13, %c0_14, %c0_15], %36 {strides = array<i32>} : memref<1x512x128xbf16, #tpu.memory_space<vmem>>, vector<1x512x128xbf16>,
    %c0_16 = arith.constant 0 : index
    %c0_17 = arith.constant 0 : index
    %37 = vector.load %arg6[%c0_16, %c0_17] : memref<128x128xbf16, #tpu.memory_space<vmem>>, vector<128x128xbf16>
    %cst_18 = arith.constant dense<0.000000e+00> : vector<512x128xf32>
    %38 = tpu.matmul %30, %37, %cst_18 {dimension_numbers = #tpu.dot_dimension_numbers<[1], [0], [0], [1], [0, 0, 1, 1], [], []>} : vector<512x128xbf16>, vector<128x128xbf16>, vector<512x128xf32> -> vector<512x128xf32>
    %39 = arith.truncf %38 : vector<512x128xf32> to vector<512x128xbf16>
    %c0_19 = arith.constant 0 : index
    %c0_20 = arith.constant 0 : index
    %c0_21 = arith.constant 0 : index
    %40 = vector.load %arg8[%c0_19, %c0_20, %c0_21] : memref<1x512x128xbf16, #tpu.memory_space<vmem>>, vector<1x512x128xbf16>
    %41 = vector.shape_cast %40 : vector<1x512x128xbf16> to vector<512x128xbf16>
    %42 = vector.shape_cast %39 : vector<512x128xbf16> to vector<1x512x128xbf16>
    tpu.vector_store %arg8[%c0_19, %c0_20, %c0_21], %42 {strides = array<i32>} : memref<1x512x128xbf16, #tpu.memory_space<vmem>>, vector<1x512x128xbf16>,
    return
  }
  func.func @transform_0(%arg0: i32, %arg1: i32) -> (i32, i32, i32) {
    %c0_i32 = arith.constant 0 : i32
    %c0_i32_0 = arith.constant 0 : i32
    return %arg0, %arg1, %c0_i32 : i32, i32, i32
  }
  func.func @transform_1(%arg0: i32, %arg1: i32) -> (i32, i32) {
    %c0_i32 = arith.constant 0 : i32
    %c0_i32_0 = arith.constant 0 : i32
    %c0_i32_1 = arith.constant 0 : i32
    return %c0_i32, %c0_i32_0 : i32, i32
  }
  func.func @transform_2(%arg0: i32, %arg1: i32) -> (i32, i32) {
    %c0_i32 = arith.constant 0 : i32
    %c0_i32_0 = arith.constant 0 : i32
    %c0_i32_1 = arith.constant 0 : i32
    return %c0_i32, %c0_i32_0 : i32, i32
  }
  func.func @transform_3(%arg0: i32, %arg1: i32) -> (i32, i32) {
    %c0_i32 = arith.constant 0 : i32
    %c0_i32_0 = arith.constant 0 : i32
    %c0_i32_1 = arith.constant 0 : i32
    return %c0_i32, %c0_i32_0 : i32, i32
  }
  func.func @transform_4(%arg0: i32, %arg1: i32) -> (i32, i32) {
    %c0_i32 = arith.constant 0 : i32
    %c0_i32_0 = arith.constant 0 : i32
    %c0_i32_1 = arith.constant 0 : i32
    return %c0_i32, %c0_i32_0 : i32, i32
  }
  func.func @transform_5(%arg0: i32, %arg1: i32) -> (i32, i32, i32) {
    %c0_i32 = arith.constant 0 : i32
    %c0_i32_0 = arith.constant 0 : i32
    return %arg0, %arg1, %c0_i32 : i32, i32, i32
  }
  func.func @transform_6(%arg0: i32, %arg1: i32) -> (i32, i32, i32) {
    %c0_i32 = arith.constant 0 : i32
    %c0_i32_0 = arith.constant 0 : i32
    return %arg0, %arg1, %c0_i32 : i32, i32, i32
  }
}

</mosaic_0001>

<bundles_post_ra>
// kernel: tpu_custom_call.1
= control target key start
LH: loop header
LB: loop body
LE: loop exit
PB: predicated region body
PF: predicated region fallthrough
CT: control target
= control target key end

     0   :  { %12 = vsyncpa [#allocation3], 0  ;;  %s5370_s0 = inlined_call_operand.hbm [shape: f32[2,512,128], index: 0, kind: input, shape index: {}]   ;;  %s5371_s1 = inlined_call_operand.vmem [shape: f32[1,128], index: 1, kind: input, shape index: {}]   ;;  %s5372_s2 = inlined_call_operand.vmem [shape: f32[1,128], index: 2, kind: input, shape index: {}]   ;;  %s5373_s3 = inlined_call_operand.hbm [shape: bf16[128,128], index: 3, kind: input, shape index: {}]   ;;  %s5374_s4 = inlined_call_operand.hbm [shape: bf16[128,128], index: 4, kind: input, shape index: {}]   ;;  %s5375_s5 = inlined_call_operand.hbm [shape: bf16[2,512,128], index: 5, kind: output, shape index: {0}]   ;;  %s5376_s6 = inlined_call_operand.hbm [shape: bf16[2,512,128], index: 6, kind: output, shape index: {1}]  }
   0x1   :  { %14 = vsyncpa [#allocation3 + $0x1], 0 }
   0x2   :  { %15 = vsyncpa [#allocation6], 0 }
   0x3   :  { %16 = vsyncpa [#allocation4], 0 }
   0x4   :  { %18 = vsyncpa [#allocation4 + $0x1], 0 }
   0x5   :  { %19 = vsyncpa [#allocation10], 0 }
   0x6   :  { %21 = vsyncpa [#allocation10 + $0x1], 0  ;;  %s4217_s21 = smov 0   ;;  %s4219_s22 = smov 0  }
   0x7   :  { %s4221_s23 = smov 0   ;;  %s4223_s24 = smov 0  }
   0x8   :  { %s4225_s25 = smov 0   ;;  %s4227_s26 = smov 0  }
   0x9 LB: > { %s2803_s27 = sadd.s32 4294967295, %s4169_s26   ;;  %s2804_s28 = sadd.s32 4294967294, %s4169_s26   ;;  %s4169_s26 = sphi %s4227_s26, %s27_s26   ;;  %s4165_s25 = sphi %s4225_s25, %s5494_s25   ;;  %s4161_s24 = sphi %s4223_s24, %s5493_s24   ;;  %s4157_s23 = sphi %s4221_s23, %s5492_s23   ;;  %s4153_s22 = sphi %s4219_s22, %s5491_s22   ;;  %s4149_s21 = sphi %s4217_s21, %s5490_s21  }
   0xa   : > { %p61_p0 = scmp.ne.s32.totalorder %s4153_s22, %s4149_s21  ;;  %p4251_p1 = scmp.eq.s32.totalorder %s2803_s27, 0 }
   0xb   : > { %p4255_p2 = scmp.eq.s32.totalorder %s2803_s27, 1  ;;  %p177_p3 = scmp.eq.s32.totalorder %s2804_s28, 1 }
   0xc   : > { %s5413_s29 = scalar_select %p4251_p1, 1, 0 }
   0xd   : > { %p4261_p4 = por %p4251_p1, %p61_p0  ;;  %p2805_p5 = scmp.ge.s32.totalorder %s4169_s26, 1 }
   0xe   : > { %p4266_p6 = por %p177_p3, %p61_p0  ;;  %p212_p7 = scmp.lt.s32.totalorder %s4169_s26, 3 }
   0xf   : > { %s5415_s7 = scalar_select %p4261_p4, 1, 0 }
  0x10   : > { %s5416_s8 = scalar_select %p4266_p6, 1, 0 }
  0x11   : > { %p4271_p8 = pnand %p2805_p5, %p212_p7  ;;  %s4171_s10 = smov [#allocation5]  }
  0x12   : > { %5417 = sst [smem:[#allocation15_spill]] %s5416_s8  ;;  %s230_s11 = sshll.u32 %s4171_s10, 4  ;;  %s4275_s11 = int_to_ptr.vmem [resolvable:$true] %s230_s11 }
  0x13   : > { %p3739_p9 = pneg %p4271_p8  ;;  %s4172_s13 = smov [#allocation7]  }
  0x14   : > { %s243_s14 = sshll.u32 %s4172_s13, 4  ;;  %s3965_s17 = scalar_lea.hbm %s5373_s3, 1024  ;;  %s4286_s14 = int_to_ptr.vmem [resolvable:$true] %s243_s14 }
  0x15   : > { %p4282_p11 = pnand %p3739_p9, %p4251_p1  ;;  %p3966_p12 = scmp.ne.s32.totalorder %s5373_s3, %s3965_s17 }
  0x16   : > { %p3972_p5 = scmp.lt.u32.totalorder %s3965_s17, %s5373_s3 }
  0x17   : > { %p3967_p13 = pneg %p4282_p11 }
  0x19   : > { %p3968_p0 = pnand %p3967_p13, %p3966_p12 }
  0x1b   : > { %p3969_p3 = pneg %p3968_p0 }
  0x1d   : > { %p3974_p7 = pnand %p3972_p5, %p3969_p3 }
  0x1f   : > { %3977 = shalt.err (!%p3974_p7)
}
  0x20   : > { %s3978_s28 = scalar_lea.vmem %s4275_s11, 1024  ;;  %p3986_p1 = scmp.lt.s32.totalorder %s4275_s11, %s4275_s11 }
  0x21   : > { %p3979_p9 = scmp.ne.s32.totalorder %s4275_s11, %s3978_s28  ;;  %p3987_p12 = scmp.lt.s32.totalorder %s3978_s28, %s3978_s28 }
  0x23   : > { %p3981_p10 = pnand %p3979_p9, %p3967_p13  ;;  %p3988_p0 = por %p3987_p12, %p3986_p1 }
  0x25   : > { %p3982_p6 = pneg %p3981_p10 }
  0x27   : > { %p3989_p4 = pnand %p3988_p0, %p3982_p6 }
  0x29   : > { %3992 = shalt.err (!%p3989_p4)
}
  0x2a   : > { %s4173_s10 = smov 64   ;;  %s4174_s13 = smov 4  }
  0x2b   : > { %3742 = dma.hbm_to_vmem [thread:$0]  (!%p4282_p11), %s5373_s3, 1024, %s4275_s11, [#allocation6], %s4173_s10, %s4173_s10, %s4174_s13  }
  0x2c   : > { %s3993_s19 = scalar_lea.hbm %s5374_s4, 1024 }
  0x2d   : > { %p3994_p1 = scmp.ne.s32.totalorder %s5374_s4, %s3993_s19  ;;  %p4000_p10 = scmp.lt.u32.totalorder %s3993_s19, %s5374_s4 }
  0x2f   : > { %p3996_p4 = pnand %p3994_p1, %p3967_p13 }
  0x31   : > { %p3997_p6 = pneg %p3996_p4 }
  0x33   : > { %p4002_p3 = pnand %p4000_p10, %p3997_p6 }
  0x35   : > { %4005 = shalt.err (!%p4002_p3)
}
  0x36   : > { %s4006_s11 = scalar_lea.vmem %s4286_s14, 1024  ;;  %p4014_p12 = scmp.lt.s32.totalorder %s4286_s14, %s4286_s14 }
  0x37   : > { %p4007_p5 = scmp.ne.s32.totalorder %s4286_s14, %s4006_s11  ;;  %p4015_p0 = scmp.lt.s32.totalorder %s4006_s11, %s4006_s11 }
  0x39   : > { %p4009_p7 = pnand %p4007_p5, %p3967_p13  ;;  %p4016_p1 = por %p4015_p0, %p4014_p12 }
  0x3b   : > { %p4010_p9 = pneg %p4009_p7 }
  0x3d   : > { %p4017_p4 = pnand %p4016_p1, %p4010_p9 }
  0x3f   : > { %4020 = shalt.err (!%p4017_p4)
}
  0x40   : > { %3745 = dma.hbm_to_vmem [thread:$0]  (!%p4282_p11), %s5374_s4, 1024, %s4286_s14, [#allocation6], %s4173_s10, %s4173_s10, %s4174_s13  }
  0x41   : > { %s39_s16 = sadd.s32 1, %s4165_s25  ;;  %s48_s17 = sadd.s32 1, %s4157_s23 }
  0x42   : > { %p41_p13 = scmp.ge.s32.totalorder %s39_s16, 2  ;;  %p55_p6 = scmp.ne.s32.totalorder %s4157_s23, %s4153_s22 }
  0x43   : > { %p56_p10 = scmp.eq.s32.totalorder %s4169_s26, 0  ;;  %p3759_p3 = scmp.lt.s32.totalorder %s4169_s26, 2 }
  0x44   : > { %s5496_s16 = smov (%p41_p13, %s39_s16), 0  ;;  %p4350_p7 = por %p4255_p2, %p55_p6 }
  0x45   : > { %p57_p5 = por %p56_p10, %p55_p6  ;;  %s43_s18 = ssub.s32 %s4165_s25, %s5496_s16 }
  0x46   : > { %s5420_s12 = scalar_select %p4350_p7, 1, 0 }
  0x47   : > { %s257_s19 = sand.u32 1, %s4157_s23   ;;  %p46_p9 = scmp.eq.s32.totalorder %s43_s18, 0 }
  0x48   : > { %s2809_s14 = sshll.u32 %s257_s19, 9  ;;  %s2972_s10 = sshll.u32 %s4165_s25, 13 }
  0x49   : > { %s4359_s13 = scalar_select %p46_p9, %s4157_s23, %s48_s17  }
  0x4a   : > { %s4364_s28 = scalar_lea.hbm %s5370_s0, %s2972_s10  ;;  %s261_s30 = scalar_lea.vmem [#allocation2], %s2809_s14 }
  0x4b   : > { %s270_s11 = sshll.u32 %s261_s30, 4  ;;  %p4368_p2 = pnand %p3759_p3, %p57_p5  ;;  %s4372_s11 = int_to_ptr.vmem [resolvable:$true] %s270_s11 }
  0x4c   : > { %s4374_s15 = scalar_lea.sflag [#allocation3], %s257_s19  ;;  %s4021_s17 = scalar_lea.hbm %s4364_s28, 8192 }
  0x4d   : > { %p4022_p11 = scmp.ne.s32.totalorder %s4364_s28, %s4021_s17  ;;  %p4023_p12 = pneg %p4368_p2 }
  0x4e   : > { %s4026_s10 = scalar_lea.hbm %s5370_s0, 16384  ;;  %p4027_p4 = scmp.lt.u32.totalorder %s4364_s28, %s5370_s0 }
  0x4f   : > { %p4024_p0 = pnand %p4023_p12, %p4022_p11  ;;  %p4028_p13 = scmp.lt.u32.totalorder %s4026_s10, %s4021_s17 }
  0x50   : > { %p4030_p10 = scmp.lt.u32.totalorder %s4021_s17, %s4364_s28 }
  0x51   : > { %p4025_p1 = pneg %p4024_p0  ;;  %p4029_p6 = por %p4028_p13, %p4027_p4 }
  0x53   : > { %p4031_p3 = por %p4030_p10, %p4029_p6 }
  0x55   : > { %p4032_p5 = pnand %p4031_p3, %p4025_p1 }
  0x57   : > { %4035 = shalt.err (!%p4032_p5)
}
  0x58   : > { %s4036_s19 = scalar_lea.vmem %s4372_s11, 8192  ;;  %s4175_s30 = smov [#allocation2]  }
  0x59   : > { %p4037_p9 = scmp.ne.s32.totalorder %s4372_s11, %s4036_s19  ;;  %s4041_s18 = sshll.u32 %s4175_s30, 4  ;;  %s4042_s18 = int_to_ptr.vmem [resolvable:$false] %s4041_s18 }
  0x5a   : > { %s4043_s14 = scalar_lea.vmem %s4042_s18, 16384  ;;  %p4044_p7 = scmp.lt.s32.totalorder %s4372_s11, %s4042_s18 }
  0x5b   : > { %p4039_p11 = pnand %p4037_p9, %p4023_p12  ;;  %p4045_p4 = scmp.lt.s32.totalorder %s4043_s14, %s4036_s19 }
  0x5d   : > { %p4040_p0 = pneg %p4039_p11  ;;  %p4046_p13 = por %p4045_p4, %p4044_p7 }
  0x5f   : > { %p4047_p6 = pnand %p4046_p13, %p4040_p0 }
  0x61   : > { %4050 = shalt.err (!%p4047_p6)
}
  0x62   : > { %s4176_s17 = smov 128   ;;  %s4177_s10 = smov 8  }
  0x63   : > { %3749 = dma.hbm_to_vmem [thread:$0]  (!%p4368_p2), %s4364_s28, 8192, %s4372_s11, %s4374_s15, %s4176_s17, %s4176_s17, %s4177_s10  }
  0x64   : > { %282 = sbr.rel (%p4271_p8) target bundleno = 887 (0x377), region = 40 }
  0x6b   : > { %s4405_s20 = sand.u32 1, %s4153_s22   ;;  %p5422_p7 = scmp.ne.s32.totalorder %s5415_s7, 0 }
  0x6c   : > { %s2813_s27 = sshll.u32 %s4405_s20, 9  ;;  %s285_s19 = scalar_lea.sflag [#allocation3], %s4405_s20 }
  0x6d   : > { %s4409_s30 = scalar_lea.vmem [#allocation2], %s2813_s27 }
  0x6e   : > { %4132 = dma.done.wait (%p5422_p7), %s285_s19, 8192  }
  0x6f   : > { %4134 = vsyncadd (%p5422_p7), %s285_s19, 4294959104  ;;  %p5423_p2 = scmp.ne.s32.totalorder %s5413_s29, 0 }
  0x71   : > { %4136 = dma.done.wait (%p5423_p2), [#allocation6], 2048  }
  0x72   : > { %4138 = vsyncadd (%p5423_p2), [#allocation6], 4294965248  ;;  %v4420_v0 = vld [vmem:[%s4409_s30] sm:$0xff]  ;;  %v4423_v1 = vld [vmem:[%s4409_s30 + $0x10] sm:$0xff]  ;;  %s2816_s14 = sshll.u32 %s4405_s20, 8  ;;  %s3101_s27 = sshll.u32 %s4161_s24, 12 }
  0x73   : > { %398 = vadd.xlane.f32.xlu0 %v4420_v0  ;;  %402 = vadd.xlane.f32.xlu1 %v4423_v1  ;;  %v4428_v2 = vld [vmem:[%s4409_s30 + $0x8] sm:$0xff]  ;;  %v4431_v3 = vld [vmem:[%s4409_s30 + $0x18] sm:$0xff]  ;;  %v4436_v4 = vld [vmem:[%s4409_s30 + $0x20] sm:$0xff]  ;;  %s5208_s17 = scalar_lea.vmem [#allocation8], %s2816_s14  ;;  %s5211_s10 = scalar_lea.vmem [#allocation9], %s2816_s14 }
  0x74   : > { %v4439_v5 = vld [vmem:[%s4409_s30 + $0x28] sm:$0xff]  ;;  %v4444_v6 = vld [vmem:[%s4409_s30 + $0x30] sm:$0xff]  ;;  %v4447_v7 = vld [vmem:[%s4409_s30 + $0x38] sm:$0xff]  ;;  %s2644_s19 = sshll.u32 %s5208_s17, 4  ;;  %s5277_s7 = scalar_lea.hbm %s5375_s5, %s3101_s27  ;;  %s5280_s19 = int_to_ptr.vmem [resolvable:$true] %s2644_s19 }
  0x75   : > { %v4452_v8 = vld [vmem:[%s4409_s30 + $0x40] sm:$0xff]  ;;  %v4455_v9 = vld [vmem:[%s4409_s30 + $0x48] sm:$0xff]  ;;  %v4460_v10 = vld [vmem:[%s4409_s30 + $0x50] sm:$0xff]  ;;  %s2662_s9 = sshll.u32 %s5211_s10, 4  ;;  %s5287_s11 = scalar_lea.hbm %s5376_s6, %s3101_s27  ;;  %s5289_s9 = int_to_ptr.vmem [resolvable:$true] %s2662_s9 }
  0x76   : > { %v4463_v11 = vld [vmem:[%s4409_s30 + $0x58] sm:$0xff]  ;;  %v4466_v12 = vld [vmem:[%s4409_s30 + $0x60] sm:$0xff]  ;;  %v4469_v13 = vld [vmem:[%s4409_s30 + $0x68] sm:$0xff]  ;;  %s2624_s8 = scalar_lea.sflag [#allocation4], %s4405_s20  ;;  %s4051_s15 = scalar_lea.vmem %s5280_s19, 4096 }
  0x77   : > { %400 = vadd.xlane.f32.xlu0 %v4428_v2  ;;  %404 = vadd.xlane.f32.xlu1 %v4431_v3  ;;  %v4474_v14 = vld [vmem:[%s4409_s30 + $0x70] sm:$0xff]  ;;  %v4477_v15 = vld [vmem:[%s4409_s30 + $0x78] sm:$0xff]  ;;  %v4482_v16 = vld [vmem:[%s4409_s30 + $0x80] sm:$0xff]  ;;  %p4052_p8 = scmp.ne.s32.totalorder %s5280_s19, %s4051_s15  ;;  %p5486_p12 = scmp.ne.s32.totalorder %s5420_s12, 0 }
  0x78   : > { %v4487_v17 = vld [vmem:[%s4409_s30 + $0x88] sm:$0xff]  ;;  %v4492_v18 = vld [vmem:[%s4409_s30 + $0x90] sm:$0xff]  ;;  %v4495_v19 = vld [vmem:[%s4409_s30 + $0x98] sm:$0xff]  ;;  %s4178_s18 = smov [#allocation8]  }
  0x79   : > { %v4500_v20 = vld [vmem:[%s4409_s30 + $0xa0] sm:$0xff]  ;;  %v4503_v21 = vld [vmem:[%s4409_s30 + $0xa8] sm:$0xff]  ;;  %v4508_v22 = vld [vmem:[%s4409_s30 + $0xb0] sm:$0xff]  ;;  %p4053_p1 = pnand %p4052_p8, %p5486_p12  ;;  %s4055_s14 = sshll.u32 %s4178_s18, 4  ;;  %s4056_s14 = int_to_ptr.vmem [resolvable:$false] %s4055_s14 }
  0x7a   : > { %v4511_v23 = vld [vmem:[%s4409_s30 + $0xb8] sm:$0xff]  ;;  %v4516_v24 = vld [vmem:[%s4409_s30 + $0xc0] sm:$0xff]  ;;  %v4519_v25 = vld [vmem:[%s4409_s30 + $0xc8] sm:$0xff]  ;;  %p4058_p3 = scmp.lt.s32.totalorder %s5280_s19, %s4056_s14 }
  0x7b   : > { %406 = vadd.xlane.f32.xlu0 %v4436_v4  ;;  %408 = vadd.xlane.f32.xlu1 %v4439_v5  ;;  %v4524_v26 = vld [vmem:[%s4409_s30 + $0xd0] sm:$0xff]  ;;  %v4527_v27 = vld [vmem:[%s4409_s30 + $0xd8] sm:$0xff]  ;;  %v4532_v28 = vld [vmem:[%s4409_s30 + $0xe0] sm:$0xff]  ;;  %p4054_p10 = pneg %p4053_p1 }
  0x7c   : > { %v4535_v29 = vld [vmem:[%s4409_s30 + $0xe8] sm:$0xff]  ;;  %v4540_v30 = vld [vmem:[%s4409_s30 + $0xf0] sm:$0xff]  ;;  %v4543_v31 = vld [vmem:[%s4409_s30 + $0xf8] sm:$0xff] }
  0x7d   : > { %v4548_v32 = vld [vmem:[%s4409_s30 + $0x100] sm:$0xff]  ;;  %v4551_v33 = vld [vmem:[%s4409_s30 + $0x108] sm:$0xff]  ;;  %v4556_v34 = vld [vmem:[%s4409_s30 + $0x110] sm:$0xff] }
  0x7e   : > { %v4559_v35 = vld [vmem:[%s4409_s30 + $0x118] sm:$0xff]  ;;  %v4564_v36 = vld [vmem:[%s4409_s30 + $0x120] sm:$0xff]  ;;  %v4567_v37 = vld [vmem:[%s4409_s30 + $0x128] sm:$0xff] }
  0x7f   : > { %410 = vadd.xlane.f32.xlu0 %v4444_v6  ;;  %412 = vadd.xlane.f32.xlu1 %v4447_v7  ;;  %v4572_v38 = vld [vmem:[%s4409_s30 + $0x130] sm:$0xff]  ;;  %v4575_v39 = vld [vmem:[%s4409_s30 + $0x138] sm:$0xff]  ;;  %v4580_v40 = vld [vmem:[%s4409_s30 + $0x140] sm:$0xff] }
  0x80   : > { %v4583_v41 = vld [vmem:[%s4409_s30 + $0x148] sm:$0xff]  ;;  %v4588_v42 = vld [vmem:[%s4409_s30 + $0x150] sm:$0xff]  ;;  %v4591_v43 = vld [vmem:[%s4409_s30 + $0x158] sm:$0xff] }
  0x81   : > { %v4596_v44 = vld [vmem:[%s4409_s30 + $0x160] sm:$0xff]  ;;  %v4599_v45 = vld [vmem:[%s4409_s30 + $0x168] sm:$0xff]  ;;  %v4604_v46 = vld [vmem:[%s4409_s30 + $0x170] sm:$0xff] }
  0x82   : > { %v4607_v47 = vld [vmem:[%s4409_s30 + $0x178] sm:$0xff]  ;;  %v4612_v48 = vld [vmem:[%s4409_s30 + $0x180] sm:$0xff]  ;;  %v4615_v49 = vld [vmem:[%s4409_s30 + $0x188] sm:$0xff] }
  0x83   : > { %414 = vadd.xlane.f32.xlu0 %v4452_v8  ;;  %416 = vadd.xlane.f32.xlu1 %v4455_v9  ;;  %v4620_v50 = vld [vmem:[%s4409_s30 + $0x190] sm:$0xff]  ;;  %v4623_v51 = vld [vmem:[%s4409_s30 + $0x198] sm:$0xff]  ;;  %v4628_v52 = vld [vmem:[%s4409_s30 + $0x1a0] sm:$0xff] }
  0x84   : > { %5424 = vst [vmem:[#allocation16_spill] sm:$0xff] %v4623_v51  ;;  %5425 = vst [vmem:[#allocation17_spill] sm:$0xff] %v4628_v52  ;;  %v4631_v53 = vld [vmem:[%s4409_s30 + $0x1a8] sm:$0xff]  ;;  %v4636_v54 = vld [vmem:[%s4409_s30 + $0x1b0] sm:$0xff] }
  0x85   : > { %5426 = vst [vmem:[#allocation18_spill] sm:$0xff] %v4631_v53  ;;  %5427 = vst [vmem:[#allocation19_spill] sm:$0xff] %v4636_v54  ;;  %v4639_v55 = vld [vmem:[%s4409_s30 + $0x1b8] sm:$0xff]  ;;  %v4644_v56 = vld [vmem:[%s4409_s30 + $0x1c0] sm:$0xff] }
  0x86   : > { %5428 = vst [vmem:[#allocation20_spill] sm:$0xff] %v4639_v55  ;;  %5429 = vst [vmem:[#allocation21_spill] sm:$0xff] %v4644_v56  ;;  %v4647_v57 = vld [vmem:[%s4409_s30 + $0x1c8] sm:$0xff]  ;;  %v4652_v58 = vld [vmem:[%s4409_s30 + $0x1d0] sm:$0xff] }
  0x87   : > { %418 = vadd.xlane.f32.xlu0 %v4460_v10  ;;  %420 = vadd.xlane.f32.xlu1 %v4463_v11  ;;  %5430 = vst [vmem:[#allocation22_spill] sm:$0xff] %v4647_v57  ;;  %5431 = vst [vmem:[#allocation23_spill] sm:$0xff] %v4652_v58  ;;  %v4655_v59 = vld [vmem:[%s4409_s30 + $0x1d8] sm:$0xff] }
  0x88   : > { %5432 = vst [vmem:[#allocation24_spill] sm:$0xff] %v4655_v59 }
  0x8b   : > { %422 = vadd.xlane.f32.xlu0 %v4466_v12  ;;  %424 = vadd.xlane.f32.xlu1 %v4469_v13 }
  0x8f   : > { %426 = vadd.xlane.f32.xlu0 %v4474_v14  ;;  %428 = vadd.xlane.f32.xlu1 %v4477_v15 }
  0x93   : > { %430 = vadd.xlane.f32.xlu0 %v4482_v16  ;;  %432 = vadd.xlane.f32.xlu1 %v4487_v17 }
  0x97   : > { %434 = vadd.xlane.f32.xlu0 %v4492_v18  ;;  %436 = vadd.xlane.f32.xlu1 %v4495_v19 }
  0x9b   : > { %438 = vadd.xlane.f32.xlu0 %v4500_v20  ;;  %440 = vadd.xlane.f32.xlu1 %v4503_v21 }
  0x9f   : > { %442 = vadd.xlane.f32.xlu0 %v4508_v22  ;;  %444 = vadd.xlane.f32.xlu1 %v4511_v23 }
  0xa3   : > { %446 = vadd.xlane.f32.xlu0 %v4516_v24  ;;  %448 = vadd.xlane.f32.xlu1 %v4519_v25 }
  0xa7   : > { %450 = vadd.xlane.f32.xlu0 %v4524_v26  ;;  %452 = vadd.xlane.f32.xlu1 %v4527_v27 }
  0xab   : > { %454 = vadd.xlane.f32.xlu0 %v4532_v28  ;;  %456 = vadd.xlane.f32.xlu1 %v4535_v29 }
  0xaf   : > { %458 = vadd.xlane.f32.xlu0 %v4540_v30  ;;  %460 = vadd.xlane.f32.xlu1 %v4543_v31 }
  0xb3   : > { %462 = vadd.xlane.f32.xlu0 %v4548_v32  ;;  %464 = vadd.xlane.f32.xlu1 %v4551_v33 }
  0xb7   : > { %466 = vadd.xlane.f32.xlu0 %v4556_v34  ;;  %468 = vadd.xlane.f32.xlu1 %v4559_v35 }
  0xbb   : > { %470 = vadd.xlane.f32.xlu0 %v4564_v36  ;;  %472 = vadd.xlane.f32.xlu1 %v4567_v37 }
  0xbf   : > { %474 = vadd.xlane.f32.xlu0 %v4572_v38  ;;  %476 = vadd.xlane.f32.xlu1 %v4575_v39 }
  0xc3   : > { %478 = vadd.xlane.f32.xlu0 %v4580_v40  ;;  %480 = vadd.xlane.f32.xlu1 %v4583_v41 }
  0xc7   : > { %482 = vadd.xlane.f32.xlu0 %v4588_v42  ;;  %484 = vadd.xlane.f32.xlu1 %v4591_v43 }
  0xcb   : > { %486 = vadd.xlane.f32.xlu0 %v4596_v44  ;;  %488 = vadd.xlane.f32.xlu1 %v4599_v45 }
  0xcf   : > { %490 = vadd.xlane.f32.xlu0 %v4604_v46  ;;  %492 = vadd.xlane.f32.xlu1 %v4607_v47 }
  0xd3   : > { %494 = vadd.xlane.f32.xlu0 %v4612_v48  ;;  %496 = vadd.xlane.f32.xlu1 %v4615_v49 }
  0xd7   : > { %498 = vadd.xlane.f32.xlu0 %v4620_v50  ;;  %500 = vadd.xlane.f32.xlu1 %v4623_v51 }
  0xdb   : > { %502 = vadd.xlane.f32.xlu0 %v4628_v52  ;;  %504 = vadd.xlane.f32.xlu1 %v4631_v53 }
  0xdf   : > { %506 = vadd.xlane.f32.xlu0 %v4636_v54  ;;  %508 = vadd.xlane.f32.xlu1 %v4639_v55 }
  0xe3   : > { %510 = vadd.xlane.f32.xlu0 %v4644_v56  ;;  %512 = vadd.xlane.f32.xlu1 %v4647_v57 }
  0xe7   : > { %514 = vadd.xlane.f32.xlu0 %v4652_v58  ;;  %516 = vadd.xlane.f32.xlu1 %v4655_v59 }
 0x100   : > { %v399_v60 = vpop.xlane.xlu0 %398  ;;  %v403_v61 = vpop.xlane.xlu1 %402 }
 0x101   : > { %v527_v62 = vmul.f32 0.0078125, %v399_v60  ;;  %v529_v63 = vmul.f32 0.0078125, %v403_v61  ;;  %v3819_v61 = vld [vmem:[#allocation5] sm:$0xff]  }
 0x102   : > { %3565 = vmatprep.subr.bf16.mxu0 %v3819_v61 }
 0x103   : > { %v4660_v55 = vsub.f32 %v4420_v0, %v527_v62  ;;  %v4663_v54 = vsub.f32 %v4423_v1, %v529_v63  ;;  %v3820_v1 = vld [vmem:[#allocation7] sm:$0xff]   ;;  %3566 = vmatpush3.bf16.msra.mxu0 %v3819_v61 }
 0x104   : > { %v401_v56 = vpop.xlane.xlu0 %400  ;;  %v405_v57 = vpop.xlane.xlu1 %404  ;;  %3645 = vmatprep.subr.bf16.mxu1 %v3820_v1 }
 0x105   : > { %5433 = vst [vmem:[#allocation25_spill] sm:$0xff] %v4660_v55  ;;  %v528_v53 = vmul.f32 0.0078125, %v401_v56  ;;  %v655_v52 = vmul.f32 %v4660_v55, %v4660_v55  ;;  %v530_v51 = vmul.f32 0.0078125, %v405_v57  ;;  %v657_v59 = vmul.f32 %v4663_v54, %v4663_v54  ;;  %3646 = vmatpush3.bf16.msra.mxu1 %v3820_v1 }
 0x107   : > { %719 = vadd.xlane.f32.xlu0 %v655_v52  ;;  %v4670_v60 = vsub.f32 %v4428_v2, %v528_v53  ;;  %v4673_v0 = vsub.f32 %v4431_v3, %v530_v51 }
 0x108   : > { %v407_v62 = vpop.xlane.xlu0 %406  ;;  %v409_v63 = vpop.xlane.xlu1 %408 }
 0x109   : > { %v531_v58 = vmul.f32 0.0078125, %v407_v62  ;;  %v656_v56 = vmul.f32 %v4670_v60, %v4670_v60  ;;  %v532_v55 = vmul.f32 0.0078125, %v409_v63  ;;  %v658_v2 = vmul.f32 %v4673_v0, %v4673_v0 }
 0x10b   : > { %723 = vadd.xlane.f32.xlu0 %v657_v59  ;;  %721 = vadd.xlane.f32.xlu1 %v656_v56  ;;  %v4680_v3 = vsub.f32 %v4436_v4, %v531_v58  ;;  %v4683_v51 = vsub.f32 %v4439_v5, %v532_v55 }
 0x10c   : > { %v411_v52 = vpop.xlane.xlu0 %410  ;;  %v413_v53 = vpop.xlane.xlu1 %412 }
 0x10d   : > { %v533_v57 = vmul.f32 0.0078125, %v411_v52  ;;  %v659_v62 = vmul.f32 %v4680_v3, %v4680_v3  ;;  %v534_v63 = vmul.f32 0.0078125, %v413_v53  ;;  %v660_v59 = vmul.f32 %v4683_v51, %v4683_v51 }
 0x10f   : > { %725 = vadd.xlane.f32.xlu1 %v658_v2  ;;  %727 = vadd.xlane.f32.xlu0 %v659_v62  ;;  %v4690_v61 = vsub.f32 %v4444_v6, %v533_v57  ;;  %v4693_v4 = vsub.f32 %v4447_v7, %v534_v63 }
 0x110   : > { %v415_v5 = vpop.xlane.xlu0 %414  ;;  %v417_v55 = vpop.xlane.xlu1 %416 }
 0x111   : > { %v535_v58 = vmul.f32 0.0078125, %v415_v5  ;;  %v661_v1 = vmul.f32 %v4690_v61, %v4690_v61  ;;  %v536_v56 = vmul.f32 0.0078125, %v417_v55  ;;  %v662_v2 = vmul.f32 %v4693_v4, %v4693_v4  ;;  %v3821_v5 = vld [vmem:[#allocation5 + $0x8] sm:$0xff]  }
 0x112   : > { %v3822_v55 = vld [vmem:[#allocation7 + $0x8] sm:$0xff]   ;;  %3567 = vmatprep.subr.bf16.mxu0 %v3821_v5 }
 0x113   : > { %729 = vadd.xlane.f32.xlu1 %v660_v59  ;;  %731 = vadd.xlane.f32.xlu0 %v661_v1  ;;  %v4700_v52 = vsub.f32 %v4452_v8, %v535_v58  ;;  %v4703_v6 = vsub.f32 %v4455_v9, %v536_v56 }
 0x114   : > { %v419_v7 = vpop.xlane.xlu0 %418  ;;  %v421_v53 = vpop.xlane.xlu1 %420  ;;  %3647 = vmatprep.subr.bf16.mxu1 %v3822_v55  ;;  %3568 = vmatpush3.bf16.msra.mxu0 %v3821_v5 }
 0x115   : > { %5434 = vst [vmem:[#allocation26_spill] sm:$0xff] %v4703_v6  ;;  %v537_v57 = vmul.f32 0.0078125, %v419_v7  ;;  %v663_v62 = vmul.f32 %v4700_v52, %v4700_v52  ;;  %v538_v63 = vmul.f32 0.0078125, %v421_v53  ;;  %v664_v59 = vmul.f32 %v4703_v6, %v4703_v6  ;;  %3648 = vmatpush3.bf16.msra.mxu1 %v3822_v55 }
 0x117   : > { %733 = vadd.xlane.f32.xlu1 %v662_v2  ;;  %735 = vadd.xlane.f32.xlu0 %v663_v62  ;;  %v4710_v8 = vsub.f32 %v4460_v10, %v537_v57  ;;  %v4713_v9 = vsub.f32 %v4463_v11, %v538_v63  ;;  %v3823_v57 = vld [vmem:[#allocation5 + $0x10] sm:$0xff]  }
 0x118   : > { %v423_v58 = vpop.xlane.xlu0 %422  ;;  %v425_v1 = vpop.xlane.xlu1 %424  ;;  %v3824_v62 = vld [vmem:[#allocation7 + $0x10] sm:$0xff]   ;;  %3569 = vmatprep.subr.bf16.mxu0 %v3823_v57 }
 0x119   : > { %v539_v56 = vmul.f32 0.0078125, %v423_v58  ;;  %v665_v7 = vmul.f32 %v4710_v8, %v4710_v8  ;;  %v540_v53 = vmul.f32 0.0078125, %v425_v1  ;;  %v666_v10 = vmul.f32 %v4713_v9, %v4713_v9  ;;  %3649 = vmatprep.subr.bf16.mxu1 %v3824_v62  ;;  %3570 = vmatpush3.bf16.msra.mxu0 %v3823_v57  ;;  %v3825_v1 = vld [vmem:[#allocation5 + $0x18] sm:$0xff]  }
 0x11a   : > { %3650 = vmatpush3.bf16.msra.mxu1 %v3824_v62  ;;  %3571 = vmatprep.subr.bf16.mxu0 %v3825_v1 }
 0x11b   : > { %737 = vadd.xlane.f32.xlu1 %v664_v59  ;;  %739 = vadd.xlane.f32.xlu0 %v665_v7  ;;  %v4720_v2 = vsub.f32 %v4466_v12, %v539_v56  ;;  %v4723_v11 = vsub.f32 %v4469_v13, %v540_v53  ;;  %v3826_v56 = vld [vmem:[#allocation7 + $0x18] sm:$0xff]  }
 0x11c   : > { %v427_v63 = vpop.xlane.xlu0 %426  ;;  %v429_v58 = vpop.xlane.xlu1 %428  ;;  %3651 = vmatprep.subr.bf16.mxu1 %v3826_v56 }
 0x11d   : > { %v541_v6 = vmul.f32 0.0078125, %v427_v63  ;;  %v667_v5 = vmul.f32 %v4720_v2, %v4720_v2  ;;  %v542_v55 = vmul.f32 0.0078125, %v429_v58  ;;  %v668_v12 = vmul.f32 %v4723_v11, %v4723_v11  ;;  %3572 = vmatpush3.bf16.msra.mxu0 %v3825_v1  ;;  %v3828_v58 = vld [vmem:[#allocation7 + $0x20] sm:$0xff]  }
 0x11e   : > { %3652 = vmatpush3.bf16.msra.mxu1 %v3826_v56 }
 0x11f   : > { %741 = vadd.xlane.f32.xlu1 %v666_v10  ;;  %743 = vadd.xlane.f32.xlu0 %v667_v5  ;;  %v4730_v13 = vsub.f32 %v4474_v14, %v541_v6  ;;  %v4733_v59 = vsub.f32 %v4477_v15, %v542_v55  ;;  %v3827_v10 = vld [vmem:[#allocation5 + $0x20] sm:$0xff]  }
 0x120   : > { %v431_v7 = vpop.xlane.xlu0 %430  ;;  %v433_v53 = vpop.xlane.xlu1 %432  ;;  %3573 = vmatprep.subr.bf16.mxu0 %v3827_v10  ;;  %3653 = vmatprep.subr.bf16.mxu1 %v3828_v58 }
 0x121   : > { %v543_v63 = vmul.f32 0.0078125, %v431_v7  ;;  %v669_v57 = vmul.f32 %v4730_v13, %v4730_v13  ;;  %v544_v62 = vmul.f32 0.0078125, %v433_v53  ;;  %v670_v14 = vmul.f32 %v4733_v59, %v4733_v59  ;;  %3574 = vmatpush3.bf16.msra.mxu0 %v3827_v10  ;;  %v3829_v53 = vld [vmem:[#allocation5 + $0x28] sm:$0xff]  }
 0x122   : > { %3654 = vmatpush3.bf16.msra.mxu1 %v3828_v58  ;;  %3575 = vmatprep.subr.bf16.mxu0 %v3829_v53 }
 0x123   : > { %745 = vadd.xlane.f32.xlu1 %v668_v12  ;;  %747 = vadd.xlane.f32.xlu0 %v669_v57  ;;  %v4740_v15 = vsub.f32 %v4482_v16, %v543_v63  ;;  %v4743_v6 = vsub.f32 %v4487_v17, %v544_v62  ;;  %v3830_v63 = vld [vmem:[#allocation7 + $0x28] sm:$0xff]  }
 0x124   : > { %v435_v5 = vpop.xlane.xlu0 %434  ;;  %v437_v55 = vpop.xlane.xlu1 %436  ;;  %3655 = vmatprep.subr.bf16.mxu1 %v3830_v63 }
 0x125   : > { %v545_v7 = vmul.f32 0.0078125, %v435_v5  ;;  %v671_v1 = vmul.f32 %v4740_v15, %v4740_v15  ;;  %v546_v56 = vmul.f32 0.0078125, %v437_v55  ;;  %v672_v16 = vmul.f32 %v4743_v6, %v4743_v6  ;;  %3576 = vmatpush3.bf16.msra.mxu0 %v3829_v53  ;;  %v3831_v55 = vld [vmem:[#allocation5 + $0x30] sm:$0xff]  }
 0x126   : > { %3656 = vmatpush3.bf16.msra.mxu1 %v3830_v63  ;;  %3577 = vmatprep.subr.bf16.mxu0 %v3831_v55 }
 0x127   : > { %749 = vadd.xlane.f32.xlu1 %v670_v14  ;;  %751 = vadd.xlane.f32.xlu0 %v671_v1  ;;  %v4750_v17 = vsub.f32 %v4492_v18, %v545_v7  ;;  %v4753_v12 = vsub.f32 %v4495_v19, %v546_v56  ;;  %v3832_v7 = vld [vmem:[#allocation7 + $0x30] sm:$0xff]  }
 0x128   : > { %v439_v57 = vpop.xlane.xlu0 %438  ;;  %v441_v62 = vpop.xlane.xlu1 %440  ;;  %3657 = vmatprep.subr.bf16.mxu1 %v3832_v7 }
 0x129   : > { %v547_v5 = vmul.f32 0.0078125, %v439_v57  ;;  %v673_v10 = vmul.f32 %v4750_v17, %v4750_v17  ;;  %v548_v58 = vmul.f32 0.0078125, %v441_v62  ;;  %v674_v18 = vmul.f32 %v4753_v12, %v4753_v12  ;;  %3578 = vmatpush3.bf16.msra.mxu0 %v3831_v55  ;;  %v3833_v62 = vld [vmem:[#allocation5 + $0x38] sm:$0xff]  }
 0x12a   : > { %3658 = vmatpush3.bf16.msra.mxu1 %v3832_v7  ;;  %3579 = vmatprep.subr.bf16.mxu0 %v3833_v62 }
 0x12b   : > { %753 = vadd.xlane.f32.xlu1 %v672_v16  ;;  %755 = vadd.xlane.f32.xlu0 %v673_v10  ;;  %v4760_v19 = vsub.f32 %v4500_v20, %v547_v5  ;;  %v4763_v14 = vsub.f32 %v4503_v21, %v548_v58  ;;  %v3834_v5 = vld [vmem:[#allocation7 + $0x38] sm:$0xff]  }
 0x12c   : > { %v443_v1 = vpop.xlane.xlu0 %442  ;;  %v445_v56 = vpop.xlane.xlu1 %444  ;;  %3659 = vmatprep.subr.bf16.mxu1 %v3834_v5 }
 0x12d   : > { %5435 = vst [vmem:[#allocation27_spill] sm:$0xff] %v4760_v19  ;;  %5436 = vst [vmem:[#allocation28_spill] sm:$0xff] %v4763_v14  ;;  %v549_v57 = vmul.f32 0.0078125, %v443_v1  ;;  %v675_v53 = vmul.f32 %v4760_v19, %v4760_v19  ;;  %v550_v63 = vmul.f32 0.0078125, %v445_v56  ;;  %v676_v20 = vmul.f32 %v4763_v14, %v4763_v14  ;;  %3580 = vmatpush3.bf16.msra.mxu0 %v3833_v62 }
 0x12e   : > { %3660 = vmatpush3.bf16.msra.mxu1 %v3834_v5 }
 0x12f   : > { %757 = vadd.xlane.f32.xlu1 %v674_v18  ;;  %759 = vadd.xlane.f32.xlu0 %v675_v53  ;;  %v4770_v21 = vsub.f32 %v4508_v22, %v549_v57  ;;  %v4773_v16 = vsub.f32 %v4511_v23, %v550_v63  ;;  %v4780_v18 = vld [vmem:[%s4409_s30 + $0x1e0] sm:$0xff]  ;;  %v4787_v63 = vld [vmem:[%s4409_s30 + $0x1e8] sm:$0xff] }
 0x130   : > { %v447_v10 = vpop.xlane.xlu0 %446  ;;  %v449_v58 = vpop.xlane.xlu1 %448 }
 0x131   : > { %5437 = vst [vmem:[#allocation29_spill] sm:$0xff] %v4770_v21  ;;  %5438 = vst [vmem:[#allocation30_spill] sm:$0xff] %v4773_v16  ;;  %v677_v55 = vmul.f32 %v4770_v21, %v4770_v21  ;;  %v678_v22 = vmul.f32 %v4773_v16, %v4773_v16  ;;  %v551_v23 = vmul.f32 0.0078125, %v447_v10  ;;  %v552_v56 = vmul.f32 0.0078125, %v449_v58 }
 0x133   : > { %761 = vadd.xlane.f32.xlu1 %v676_v20  ;;  %763 = vadd.xlane.f32.xlu0 %v677_v55  ;;  %v4784_v53 = vsub.f32 %v4516_v24, %v551_v23  ;;  %v4790_v20 = vld [vmem:[%s4409_s30 + $0x1f0] sm:$0xff]  ;;  %v4793_v10 = vsub.f32 %v4519_v25, %v552_v56  ;;  %v4803_v23 = vld [vmem:[%s4409_s30 + $0x1f8] sm:$0xff]  ;;  %s4057_s30 = scalar_lea.vmem %s4056_s14, 8192 }
 0x134   : > { %v451_v7 = vpop.xlane.xlu0 %450  ;;  %v453_v1 = vpop.xlane.xlu1 %452  ;;  %p4059_p5 = scmp.lt.s32.totalorder %s4057_s30, %s4051_s15 }
 0x135   : > { %v553_v57 = vmul.f32 0.0078125, %v451_v7  ;;  %5439 = vst [vmem:[#allocation31_spill] sm:$0xff] %v4784_v53  ;;  %v679_v58 = vmul.f32 %v4784_v53, %v4784_v53  ;;  %v554_v55 = vmul.f32 0.0078125, %v453_v1  ;;  %v680_v25 = vmul.f32 %v4793_v10, %v4793_v10 }
 0x136   : > { %p4060_p9 = por %p4059_p5, %p4058_p3 }
 0x137   : > { %765 = vadd.xlane.f32.xlu1 %v678_v22  ;;  %518 = vadd.xlane.f32.xlu0 %v4780_v18  ;;  %v4800_v24 = vsub.f32 %v4524_v26, %v553_v57  ;;  %v4811_v1 = vsub.f32 %v4527_v27, %v554_v55 }
 0x138   : > { %v455_v62 = vpop.xlane.xlu0 %454  ;;  %v457_v5 = vpop.xlane.xlu1 %456  ;;  %p4061_p11 = pnand %p4060_p9, %p4054_p10 }
 0x139   : > { %v555_v22 = vmul.f32 0.0078125, %v455_v62  ;;  %v556_v56 = vmul.f32 0.0078125, %v457_v5  ;;  %v681_v21 = vmul.f32 %v4800_v24, %v4800_v24 }
 0x13b   : > { %520 = vadd.xlane.f32.xlu1 %v4787_v63  ;;  %522 = vadd.xlane.f32.xlu0 %v4790_v20  ;;  %v4814_v26 = vsub.f32 %v4532_v28, %v555_v22  ;;  %v4817_v19 = vsub.f32 %v4535_v29, %v556_v56 }
 0x13c   : > { %v459_v7 = vpop.xlane.xlu0 %458  ;;  %v461_v16 = vpop.xlane.xlu1 %460 }
 0x13d   : > { %v557_v53 = vmul.f32 0.0078125, %v459_v7  ;;  %v558_v14 = vmul.f32 0.0078125, %v461_v16  ;;  %v683_v27 = vmul.f32 %v4814_v26, %v4814_v26  ;;  %v684_v29 = vmul.f32 %v4817_v19, %v4817_v19 }
 0x13f   : > { %524 = vadd.xlane.f32.xlu1 %v4803_v23  ;;  %767 = vadd.xlane.f32.xlu0 %v679_v58  ;;  %v4820_v5 = vsub.f32 %v4540_v30, %v557_v53  ;;  %v682_v58 = vmul.f32 %v4811_v1, %v4811_v1  ;;  %v4827_v7 = vsub.f32 %v4543_v31, %v558_v14 }
 0x140   : > { %v463_v57 = vpop.xlane.xlu0 %462  ;;  %v465_v62 = vpop.xlane.xlu1 %464 }
 0x141   : > { %5440 = vst [vmem:[#allocation32_spill] sm:$0xff] %v4820_v5  ;;  %v559_v55 = vmul.f32 0.0078125, %v463_v57  ;;  %v560_v16 = vmul.f32 0.0078125, %v465_v62  ;;  %v686_v57 = vmul.f32 %v4827_v7, %v4827_v7 }
 0x143   : > { %769 = vadd.xlane.f32.xlu1 %v680_v25  ;;  %771 = vadd.xlane.f32.xlu0 %v681_v21  ;;  %v4832_v30 = vsub.f32 %v4548_v32, %v559_v55  ;;  %v685_v21 = vmul.f32 %v4820_v5, %v4820_v5  ;;  %v4839_v14 = vsub.f32 %v4551_v33, %v560_v16 }
 0x144   : > { %v467_v28 = vpop.xlane.xlu0 %466  ;;  %v469_v22 = vpop.xlane.xlu1 %468 }
 0x145   : > { %v561_v53 = vmul.f32 0.0078125, %v467_v28  ;;  %v562_v31 = vmul.f32 0.0078125, %v469_v22  ;;  %v687_v32 = vmul.f32 %v4832_v30, %v4832_v30  ;;  %v688_v33 = vmul.f32 %v4839_v14, %v4839_v14 }
 0x147   : > { %773 = vadd.xlane.f32.xlu1 %v682_v58  ;;  %775 = vadd.xlane.f32.xlu0 %v683_v27  ;;  %v4842_v58 = vsub.f32 %v4556_v34, %v561_v53  ;;  %v4847_v28 = vsub.f32 %v4559_v35, %v562_v31 }
 0x148   : > { %v471_v25 = vpop.xlane.xlu0 %470  ;;  %v473_v56 = vpop.xlane.xlu1 %472 }
 0x149   : > { %v563_v27 = vmul.f32 0.0078125, %v471_v25  ;;  %v564_v5 = vmul.f32 0.0078125, %v473_v56  ;;  %v689_v34 = vmul.f32 %v4842_v58, %v4842_v58  ;;  %v690_v35 = vmul.f32 %v4847_v28, %v4847_v28 }
 0x14b   : > { %777 = vadd.xlane.f32.xlu1 %v684_v29  ;;  %779 = vadd.xlane.f32.xlu0 %v685_v21  ;;  %v4850_v22 = vsub.f32 %v4564_v36, %v563_v27  ;;  %v4857_v53 = vsub.f32 %v4567_v37, %v564_v5 }
 0x14c   : > { %v475_v62 = vpop.xlane.xlu0 %474  ;;  %v477_v55 = vpop.xlane.xlu1 %476 }
 0x14d   : > { %v565_v29 = vmul.f32 0.0078125, %v475_v62  ;;  %v691_v25 = vmul.f32 %v4850_v22, %v4850_v22  ;;  %v566_v56 = vmul.f32 0.0078125, %v477_v55  ;;  %v692_v27 = vmul.f32 %v4857_v53, %v4857_v53 }
 0x14f   : > { %781 = vadd.xlane.f32.xlu1 %v686_v57  ;;  %783 = vadd.xlane.f32.xlu0 %v687_v32  ;;  %v4862_v36 = vsub.f32 %v4572_v38, %v565_v29  ;;  %v4869_v5 = vsub.f32 %v4575_v39, %v566_v56 }
 0x150   : > { %v479_v21 = vpop.xlane.xlu0 %478  ;;  %v481_v16 = vpop.xlane.xlu1 %480 }
 0x151   : > { %v567_v57 = vmul.f32 0.0078125, %v479_v21  ;;  %v568_v37 = vmul.f32 0.0078125, %v481_v16  ;;  %v693_v38 = vmul.f32 %v4862_v36, %v4862_v36  ;;  %v694_v39 = vmul.f32 %v4869_v5, %v4869_v5 }
 0x153   : > { %785 = vadd.xlane.f32.xlu1 %v688_v33  ;;  %787 = vadd.xlane.f32.xlu0 %v689_v34  ;;  %v4872_v62 = vsub.f32 %v4580_v40, %v567_v57  ;;  %v4877_v29 = vsub.f32 %v4583_v41, %v568_v37 }
 0x154   : > { %v483_v31 = vpop.xlane.xlu0 %482  ;;  %v485_v32 = vpop.xlane.xlu1 %484 }
 0x155   : > { %v569_v33 = vmul.f32 0.0078125, %v483_v31  ;;  %v570_v21 = vmul.f32 0.0078125, %v485_v32  ;;  %v695_v40 = vmul.f32 %v4872_v62, %v4872_v62  ;;  %v696_v41 = vmul.f32 %v4877_v29, %v4877_v29 }
 0x157   : > { %789 = vadd.xlane.f32.xlu1 %v690_v35  ;;  %791 = vadd.xlane.f32.xlu0 %v691_v25  ;;  %v4880_v16 = vsub.f32 %v4588_v42, %v569_v33  ;;  %v4887_v57 = vsub.f32 %v4591_v43, %v570_v21 }
 0x158   : > { %v487_v55 = vpop.xlane.xlu0 %486  ;;  %v489_v34 = vpop.xlane.xlu1 %488 }
 0x159   : > { %v571_v35 = vmul.f32 0.0078125, %v487_v55  ;;  %v697_v31 = vmul.f32 %v4880_v16, %v4880_v16  ;;  %v572_v32 = vmul.f32 0.0078125, %v489_v34  ;;  %v698_v33 = vmul.f32 %v4887_v57, %v4887_v57 }
 0x15b   : > { %793 = vadd.xlane.f32.xlu1 %v692_v27  ;;  %795 = vadd.xlane.f32.xlu0 %v693_v38  ;;  %v4892_v42 = vsub.f32 %v4596_v44, %v571_v35  ;;  %v4899_v55 = vsub.f32 %v4599_v45, %v572_v32 }
 0x15c   : > { %v491_v25 = vpop.xlane.xlu0 %490  ;;  %v493_v56 = vpop.xlane.xlu1 %492 }
 0x15d   : > { %v573_v27 = vmul.f32 0.0078125, %v491_v25  ;;  %v574_v43 = vmul.f32 0.0078125, %v493_v56  ;;  %v699_v44 = vmul.f32 %v4892_v42, %v4892_v42  ;;  %v700_v45 = vmul.f32 %v4899_v55, %v4899_v55 }
 0x15f   : > { %797 = vadd.xlane.f32.xlu1 %v694_v39  ;;  %799 = vadd.xlane.f32.xlu0 %v695_v40  ;;  %v4902_v21 = vsub.f32 %v4604_v46, %v573_v27  ;;  %v4907_v35 = vsub.f32 %v4607_v47, %v574_v43 }
 0x160   : > { %v495_v37 = vpop.xlane.xlu0 %494  ;;  %v497_v38 = vpop.xlane.xlu1 %496 }
 0x161   : > { %5441 = vst [vmem:[#allocation33_spill] sm:$0xff] %v4902_v21  ;;  %v575_v39 = vmul.f32 0.0078125, %v495_v37  ;;  %5442 = vst [vmem:[#allocation34_spill] sm:$0xff] %v4907_v35  ;;  %v576_v25 = vmul.f32 0.0078125, %v497_v38  ;;  %v701_v46 = vmul.f32 %v4902_v21, %v4902_v21  ;;  %v702_v47 = vmul.f32 %v4907_v35, %v4907_v35 }
 0x163   : > { %801 = vadd.xlane.f32.xlu1 %v696_v41  ;;  %803 = vadd.xlane.f32.xlu0 %v697_v31  ;;  %v4910_v56 = vsub.f32 %v4612_v48, %v575_v39  ;;  %v4917_v27 = vsub.f32 %v4615_v49, %v576_v25 }
 0x164   : > { %v499_v34 = vpop.xlane.xlu0 %498  ;;  %v501_v40 = vpop.xlane.xlu1 %500 }
 0x165   : > { %5443 = vst [vmem:[#allocation35_spill] sm:$0xff] %v4910_v56  ;;  %v577_v41 = vmul.f32 0.0078125, %v499_v34  ;;  %5444 = vst [vmem:[#allocation36_spill] sm:$0xff] %v4917_v27  ;;  %v703_v37 = vmul.f32 %v4910_v56, %v4910_v56  ;;  %v578_v38 = vmul.f32 0.0078125, %v501_v40  ;;  %v704_v39 = vmul.f32 %v4917_v27, %v4917_v27  ;;  %v5446_v34 = vld [vmem:[#allocation16_spill] sm:$0xff] }
 0x167   : > { %805 = vadd.xlane.f32.xlu1 %v698_v33  ;;  %807 = vadd.xlane.f32.xlu0 %v699_v44  ;;  %v4922_v48 = vsub.f32 %v4620_v50, %v577_v41  ;;  %v4929_v25 = vsub.f32 %v5446_v34, %v578_v38 }
 0x168   : > { %v503_v31 = vpop.xlane.xlu0 %502  ;;  %v505_v32 = vpop.xlane.xlu1 %504 }
 0x169   : > { %5445 = vst [vmem:[#allocation37_spill] sm:$0xff] %v4922_v48  ;;  %v579_v33 = vmul.f32 0.0078125, %v503_v31  ;;  %v580_v49 = vmul.f32 0.0078125, %v505_v32  ;;  %5447 = vst [vmem:[#allocation16_spill] sm:$0xff] %v4929_v25  ;;  %v705_v50 = vmul.f32 %v4922_v48, %v4922_v48  ;;  %v5450_v31 = vld [vmem:[#allocation18_spill] sm:$0xff]  ;;  %v5452_v32 = vld [vmem:[#allocation19_spill] sm:$0xff] }
 0x16b   : > { %809 = vadd.xlane.f32.xlu1 %v700_v45  ;;  %811 = vadd.xlane.f32.xlu0 %v701_v46  ;;  %v5448_v45 = vld [vmem:[#allocation17_spill] sm:$0xff]  ;;  %v4937_v56 = vsub.f32 %v5450_v31, %v580_v49 }
 0x16c   : > { %v507_v43 = vpop.xlane.xlu0 %506  ;;  %v509_v44 = vpop.xlane.xlu1 %508  ;;  %v4932_v46 = vsub.f32 %v5448_v45, %v579_v33 }
 0x16d   : > { %v581_v41 = vmul.f32 0.0078125, %v507_v43  ;;  %5451 = vst [vmem:[#allocation18_spill] sm:$0xff] %v4937_v56  ;;  %v582_v35 = vmul.f32 0.0078125, %v509_v44  ;;  %v5454_v43 = vld [vmem:[#allocation20_spill] sm:$0xff]  ;;  %v708_v44 = vmul.f32 %v4937_v56, %v4937_v56  ;;  %v5460_v56 = vld [vmem:[#allocation23_spill] sm:$0xff] }
 0x16e   : > { %5449 = vst [vmem:[#allocation17_spill] sm:$0xff] %v4932_v46  ;;  %v707_v38 = vmul.f32 %v4932_v46, %v4932_v46 }
 0x16f   : > { %813 = vadd.xlane.f32.xlu1 %v702_v47  ;;  %815 = vadd.xlane.f32.xlu0 %v703_v37  ;;  %v4940_v47 = vsub.f32 %v5452_v32, %v581_v41  ;;  %v706_v37 = vmul.f32 %v4929_v25, %v4929_v25  ;;  %v4947_v45 = vsub.f32 %v5454_v43, %v582_v35  ;;  %v5458_v35 = vld [vmem:[#allocation22_spill] sm:$0xff] }
 0x170   : > { %v511_v40 = vpop.xlane.xlu0 %510  ;;  %v513_v21 = vpop.xlane.xlu1 %512 }
 0x171   : > { %5453 = vst [vmem:[#allocation19_spill] sm:$0xff] %v4940_v47  ;;  %v583_v33 = vmul.f32 0.0078125, %v511_v40  ;;  %5455 = vst [vmem:[#allocation20_spill] sm:$0xff] %v4947_v45  ;;  %v584_v41 = vmul.f32 0.0078125, %v513_v21  ;;  %v710_v40 = vmul.f32 %v4947_v45, %v4947_v45  ;;  %v5462_v21 = vld [vmem:[#allocation24_spill] sm:$0xff] }
 0x173   : > { %817 = vadd.xlane.f32.xlu1 %v704_v39  ;;  %819 = vadd.xlane.f32.xlu0 %v705_v50  ;;  %v5456_v39 = vld [vmem:[#allocation21_spill] sm:$0xff]  ;;  %v709_v50 = vmul.f32 %v4940_v47, %v4940_v47  ;;  %v4959_v43 = vsub.f32 %v5458_v35, %v584_v41 }
 0x174   : > { %v515_v34 = vpop.xlane.xlu0 %514  ;;  %v4952_v49 = vsub.f32 %v5456_v39, %v583_v33  ;;  %v517_v32 = vpop.xlane.xlu1 %516 }
 0x175   : > { %v585_v31 = vmul.f32 0.0078125, %v515_v34  ;;  %5459 = vst [vmem:[#allocation22_spill] sm:$0xff] %v4959_v43  ;;  %v586_v33 = vmul.f32 0.0078125, %v517_v32  ;;  %v712_v39 = vmul.f32 %v4959_v43, %v4959_v43 }
 0x176   : > { %5457 = vst [vmem:[#allocation21_spill] sm:$0xff] %v4952_v49 }
 0x177   : > { %821 = vadd.xlane.f32.xlu1 %v706_v37  ;;  %823 = vadd.xlane.f32.xlu0 %v707_v38  ;;  %v4962_v37 = vsub.f32 %v5460_v56, %v585_v31  ;;  %v711_v38 = vmul.f32 %v4952_v49, %v4952_v49  ;;  %v4967_v34 = vsub.f32 %v5462_v21, %v586_v33 }
 0x179   : > { %5461 = vst [vmem:[#allocation23_spill] sm:$0xff] %v4962_v37  ;;  %5463 = vst [vmem:[#allocation24_spill] sm:$0xff] %v4967_v34  ;;  %v714_v56 = vmul.f32 %v4967_v34, %v4967_v34 }
 0x17b   : > { %825 = vadd.xlane.f32.xlu1 %v708_v44  ;;  %827 = vadd.xlane.f32.xlu0 %v709_v50  ;;  %v713_v44 = vmul.f32 %v4962_v37, %v4962_v37 }
 0x17f   : > { %829 = vadd.xlane.f32.xlu1 %v710_v40  ;;  %831 = vadd.xlane.f32.xlu0 %v711_v38 }
 0x183   : > { %833 = vadd.xlane.f32.xlu1 %v712_v39  ;;  %835 = vadd.xlane.f32.xlu0 %v713_v44 }
 0x187   : > { %837 = vadd.xlane.f32.xlu1 %v714_v56 }
 0x194   : > { %v720_v50 = vpop.xlane.xlu0 %719 }
 0x195   : > { %v847_v41 = vmul.f32 0.0078125, %v720_v50 }
 0x197   : > { %v911_v31 = vadd.f32 1e-05, %v847_v41 }
 0x198   : > { %v722_v32 = vpop.xlane.xlu1 %721  ;;  %v724_v40 = vpop.xlane.xlu0 %723 }
 0x199   : > { %3835 = vrsqrt.f32 %v911_v31  ;;  %v848_v35 = vmul.f32 0.0078125, %v722_v32  ;;  %v849_v38 = vmul.f32 0.0078125, %v724_v40 }
 0x19b   : > { %v912_v33 = vadd.f32 1e-05, %v848_v35  ;;  %v913_v21 = vadd.f32 1e-05, %v849_v38  ;;  %v5464_v38 = vld [vmem:[#allocation25_spill] sm:$0xff] }
 0x19c   : > { %v726_v43 = vpop.xlane.xlu1 %725  ;;  %v728_v49 = vpop.xlane.xlu0 %727 }
 0x19d   : > { %3837 = vrsqrt.f32 %v912_v33  ;;  %v850_v37 = vmul.f32 0.0078125, %v726_v43  ;;  %v851_v39 = vmul.f32 0.0078125, %v728_v49  ;;  %v4979_v49 = vld [vmem:[%s5371_s1] ss:$0 sm:$0xff] }
 0x19e   : > { %3839 = vrsqrt.f32 %v913_v21 }
 0x19f   : > { %v914_v44 = vadd.f32 1e-05, %v850_v37  ;;  %v915_v45 = vadd.f32 1e-05, %v851_v39 }
 0x1a0   : > { %v730_v34 = vpop.xlane.xlu1 %729  ;;  %v732_v56 = vpop.xlane.xlu0 %731 }
 0x1a1   : > { %3841 = vrsqrt.f32 %v914_v44  ;;  %v852_v50 = vmul.f32 0.0078125, %v730_v34  ;;  %v853_v41 = vmul.f32 0.0078125, %v732_v56 }
 0x1a2   : > { %3843 = vrsqrt.f32 %v915_v45 }
 0x1a3   : > { %v3836_v47 = vpop.eup %3835  ;;  %v916_v31 = vadd.f32 1e-05, %v852_v50  ;;  %v917_v32 = vadd.f32 1e-05, %v853_v41 }
 0x1a4   : > { %v734_v40 = vpop.xlane.xlu1 %733  ;;  %v736_v35 = vpop.xlane.xlu0 %735  ;;  %v1039_v46 = vmul.f32 %v3836_v47, %v5464_v38 }
 0x1a5   : > { %3845 = vrsqrt.f32 %v916_v31  ;;  %v854_v33 = vmul.f32 0.0078125, %v734_v40  ;;  %v855_v43 = vmul.f32 0.0078125, %v736_v35  ;;  %v4986_v31 = vld [vmem:[%s5372_s2] ss:$0 sm:$0xff] }
 0x1a6   : > { %3847 = vrsqrt.f32 %v917_v32  ;;  %v1110_v50 = vmul.f32 %v4979_v49, %v1039_v46 }
 0x1a7   : > { %v3838_v37 = vpop.eup %3837  ;;  %v918_v34 = vadd.f32 1e-05, %v854_v33  ;;  %v919_v21 = vadd.f32 1e-05, %v855_v43 }
 0x1a8   : > { %v3840_v45 = vpop.eup %3839  ;;  %v738_v39 = vpop.xlane.xlu1 %737  ;;  %v1040_v56 = vmul.f32 %v3838_v37, %v4670_v60 }
 0x1a9   : > { %v740_v44 = vpop.xlane.xlu0 %739  ;;  %3849 = vrsqrt.f32 %v918_v34  ;;  %v856_v47 = vmul.f32 0.0078125, %v738_v39  ;;  %v1041_v32 = vmul.f32 %v3840_v45, %v4663_v54  ;;  %v1181_v34 = vadd.f32 %v4986_v31, %v1110_v50 }
 0x1aa   : > { %v857_v41 = vmul.f32 0.0078125, %v740_v44  ;;  %3851 = vrsqrt.f32 %v919_v21  ;;  %v1111_v40 = vmul.f32 %v4979_v49, %v1040_v56 }
 0x1ab   : > { %v3842_v35 = vpop.eup %3841  ;;  %v920_v38 = vadd.f32 1e-05, %v856_v47  ;;  %v1112_v60 = vmul.f32 %v4979_v49, %v1041_v32 }
 0x1ac   : > { %v921_v33 = vadd.f32 1e-05, %v857_v41  ;;  %v3844_v43 = vpop.eup %3843  ;;  %v742_v46 = vpop.xlane.xlu1 %741  ;;  %v1182_v39 = vadd.f32 %v4986_v31, %v1111_v40  ;;  %v1042_v44 = vmul.f32 %v3842_v35, %v4673_v0 }
 0x1ad   : > { %v744_v37 = vpop.xlane.xlu0 %743  ;;  %3853 = vrsqrt.f32 %v920_v38  ;;  %v858_v25 = vmul.f32 0.0078125, %v742_v46  ;;  %v1043_v56 = vmul.f32 %v3844_v43, %v4680_v3  ;;  %v1183_v48 = vadd.f32 %v4986_v31, %v1112_v60 }
 0x1ae   : > { %v859_v54 = vmul.f32 0.0078125, %v744_v37  ;;  %3855 = vrsqrt.f32 %v921_v33  ;;  %v1245_v21 = vpack.c.bf16 %v1182_v39, %v1181_v34  ;;  %v1113_v45 = vmul.f32 %v4979_v49, %v1042_v44 }
 0x1af   : > { %v3846_v47 = vpop.eup %3845  ;;  %v922_v41 = vadd.f32 1e-05, %v858_v25  ;;  %v1114_v38 = vmul.f32 %v4979_v49, %v1043_v56 }
 0x1b0   : > { %v923_v32 = vadd.f32 1e-05, %v859_v54  ;;  %v3848_v27 = vpop.eup %3847  ;;  %v746_v50 = vpop.xlane.xlu1 %745  ;;  %3581 = vmatprep.mubr.bf16.mxu0 %v1245_v21  ;;  %3661 = vmatprep.mubr.bf16.mxu1 %v1245_v21  ;;  %v1184_v0 = vadd.f32 %v4986_v31, %v1113_v45  ;;  %v1044_v35 = vmul.f32 %v3846_v47, %v4683_v51 }
 0x1b1   : > { %v748_v40 = vpop.xlane.xlu0 %747  ;;  %3857 = vrsqrt.f32 %v922_v41  ;;  %v860_v33 = vmul.f32 0.0078125, %v746_v50  ;;  %v1045_v3 = vmul.f32 %v3848_v27, %v4690_v61  ;;  %v1185_v21 = vadd.f32 %v4986_v31, %v1114_v38 }
 0x1b2   : > { %v861_v46 = vmul.f32 0.0078125, %v748_v40  ;;  %3859 = vrsqrt.f32 %v923_v32  ;;  %v1246_v25 = vpack.c.bf16 %v1184_v0, %v1183_v48  ;;  %v1115_v60 = vmul.f32 %v4979_v49, %v1044_v35 }
 0x1b3   : > { %v3850_v43 = vpop.eup %3849  ;;  %v924_v37 = vadd.f32 1e-05, %v860_v33  ;;  %v1116_v39 = vmul.f32 %v4979_v49, %v1045_v3 }
 0x1b4   : > { %v925_v34 = vadd.f32 1e-05, %v861_v46  ;;  %v3852_v44 = vpop.eup %3851  ;;  %v750_v54 = vpop.xlane.xlu1 %749  ;;  %3582 = vmatmul.mubr.bf16.vlgmr.msra.gmra.mrb[0].mxu0 %v1246_v25  ;;  %3662 = vmatmul.mubr.bf16.vlgmr.msra.gmra.mrb[0].mxu1 %v1246_v25  ;;  %v1186_v45 = vadd.f32 %v4986_v31, %v1115_v60  ;;  %v1046_v61 = vmul.f32 %v3850_v43, %v4693_v4  ;;  %v5465_v46 = vld [vmem:[#allocation26_spill] sm:$0xff] }
 0x1b5   : > { %v752_v51 = vpop.xlane.xlu0 %751  ;;  %3861 = vrsqrt.f32 %v924_v37  ;;  %v862_v27 = vmul.f32 0.0078125, %v750_v54  ;;  %v1047_v41 = vmul.f32 %v3852_v44, %v4700_v52  ;;  %v1187_v0 = vadd.f32 %v4986_v31, %v1116_v39 }
 0x1b6   : > { %v863_v48 = vmul.f32 0.0078125, %v752_v51  ;;  %3863 = vrsqrt.f32 %v925_v34  ;;  %v1247_v56 = vpack.c.bf16 %v1186_v45, %v1185_v21  ;;  %v1117_v47 = vmul.f32 %v4979_v49, %v1046_v61 }
 0x1b7   : > { %v3854_v32 = vpop.eup %3853  ;;  %v926_v50 = vadd.f32 1e-05, %v862_v27  ;;  %v1118_v25 = vmul.f32 %v4979_v49, %v1047_v41 }
 0x1b8   : > { %v927_v40 = vadd.f32 1e-05, %v863_v48  ;;  %v3856_v35 = vpop.eup %3855  ;;  %v754_v38 = vpop.xlane.xlu1 %753  ;;  %3585 = vmatprep.mubr.bf16.mxu0 %v1247_v56  ;;  %3665 = vmatprep.mubr.bf16.mxu1 %v1247_v56  ;;  %v1188_v4 = vadd.f32 %v4986_v31, %v1117_v47  ;;  %v1048_v3 = vmul.f32 %v3854_v32, %v5465_v46 }
 0x1b9   : > { %v756_v33 = vpop.xlane.xlu0 %755  ;;  %3865 = vrsqrt.f32 %v926_v50  ;;  %v864_v60 = vmul.f32 0.0078125, %v754_v38  ;;  %v1049_v52 = vmul.f32 %v3856_v35, %v4710_v8  ;;  %v1189_v27 = vadd.f32 %v4986_v31, %v1118_v25 }
 0x1ba   : > { %v865_v43 = vmul.f32 0.0078125, %v756_v33  ;;  %3867 = vrsqrt.f32 %v927_v40  ;;  %v1248_v37 = vpack.c.bf16 %v1188_v4, %v1187_v0  ;;  %v1119_v34 = vmul.f32 %v4979_v49, %v1048_v3 }
 0x1bb   : > { %v3858_v39 = vpop.eup %3857  ;;  %v928_v44 = vadd.f32 1e-05, %v864_v60  ;;  %v1120_v51 = vmul.f32 %v4979_v49, %v1049_v52 }
 0x1bc   : > { %v929_v54 = vadd.f32 1e-05, %v865_v43  ;;  %v3860_v21 = vpop.eup %3859  ;;  %v758_v45 = vpop.xlane.xlu1 %757  ;;  %3586 = vmatmul.mubr.bf16.gmra.mrb[4].mxu0 %v1248_v37  ;;  %3666 = vmatmul.mubr.bf16.gmra.mrb[4].mxu1 %v1248_v37  ;;  %v1190_v48 = vadd.f32 %v4986_v31, %v1119_v34  ;;  %v1050_v8 = vmul.f32 %v3858_v39, %v4713_v9 }
 0x1bd   : > { %v760_v61 = vpop.xlane.xlu0 %759  ;;  %3869 = vrsqrt.f32 %v928_v44  ;;  %v866_v56 = vmul.f32 0.0078125, %v758_v45  ;;  %v1051_v50 = vmul.f32 %v3860_v21, %v4720_v2  ;;  %v1191_v38 = vadd.f32 %v4986_v31, %v1120_v51 }
 0x1be   : > { %v867_v47 = vmul.f32 0.0078125, %v760_v61  ;;  %3871 = vrsqrt.f32 %v929_v54  ;;  %v1249_v41 = vpack.c.bf16 %v1190_v48, %v1189_v27  ;;  %v1121_v32 = vmul.f32 %v4979_v49, %v1050_v8 }
 0x1bf   : > { %v3862_v40 = vpop.eup %3861  ;;  %v930_v0 = vadd.f32 1e-05, %v866_v56  ;;  %v1122_v25 = vmul.f32 %v4979_v49, %v1051_v50 }
 0x1c0   : > { %v931_v35 = vadd.f32 1e-05, %v867_v47  ;;  %v3864_v33 = vpop.eup %3863  ;;  %v762_v4 = vpop.xlane.xlu1 %761  ;;  %3589 = vmatprep.mubr.bf16.mxu0 %v1249_v41  ;;  %3669 = vmatprep.mubr.bf16.mxu1 %v1249_v41  ;;  %v1192_v9 = vadd.f32 %v4986_v31, %v1121_v32  ;;  %v1052_v3 = vmul.f32 %v3862_v40, %v4723_v11 }
 0x1c1   : > { %v764_v46 = vpop.xlane.xlu0 %763  ;;  %3873 = vrsqrt.f32 %v930_v0  ;;  %v868_v60 = vmul.f32 0.0078125, %v762_v4  ;;  %v1053_v2 = vmul.f32 %v3864_v33, %v4730_v13  ;;  %v1193_v45 = vadd.f32 %v4986_v31, %v1122_v25 }
 0x1c2   : > { %v869_v43 = vmul.f32 0.0078125, %v764_v46  ;;  %3875 = vrsqrt.f32 %v931_v35  ;;  %v1250_v52 = vpack.c.bf16 %v1192_v9, %v1191_v38  ;;  %v1123_v37 = vmul.f32 %v4979_v49, %v1052_v3 }
 0x1c3   : > { %v3866_v34 = vpop.eup %3865  ;;  %v932_v39 = vadd.f32 1e-05, %v868_v60  ;;  %v1124_v54 = vmul.f32 %v4979_v49, %v1053_v2 }
 0x1c4   : > { %v933_v44 = vadd.f32 1e-05, %v869_v43  ;;  %v3868_v51 = vpop.eup %3867  ;;  %v766_v21 = vpop.xlane.xlu1 %765  ;;  %3590 = vmatmul.mubr.bf16.gmra.mrb[8].mxu0 %v1250_v52  ;;  %3670 = vmatmul.mubr.bf16.gmra.mrb[8].mxu1 %v1250_v52  ;;  %v1194_v61 = vadd.f32 %v4986_v31, %v1123_v37  ;;  %v1054_v13 = vmul.f32 %v3866_v34, %v4733_v59 }
 0x1c5   : > { %v519_v11 = vpop.xlane.xlu0 %518  ;;  %3877 = vrsqrt.f32 %v932_v39  ;;  %v870_v27 = vmul.f32 0.0078125, %v766_v21  ;;  %v1055_v47 = vmul.f32 %v3868_v51, %v4740_v15  ;;  %v1195_v40 = vadd.f32 %v4986_v31, %v1124_v54 }
 0x1c6   : > { %v587_v48 = vmul.f32 0.0078125, %v519_v11  ;;  %3879 = vrsqrt.f32 %v933_v44  ;;  %v1251_v8 = vpack.c.bf16 %v1194_v61, %v1193_v45  ;;  %v1125_v56 = vmul.f32 %v4979_v49, %v1054_v13  ;;  %v5466_v45 = vld [vmem:[#allocation27_spill] sm:$0xff] }
 0x1c7   : > { %v3870_v41 = vpop.eup %3869  ;;  %v934_v32 = vadd.f32 1e-05, %v870_v27  ;;  %v1126_v4 = vmul.f32 %v4979_v49, %v1055_v47 }
 0x1c8   : > { %v5033_v50 = vsub.f32 %v4780_v18, %v587_v48  ;;  %v3872_v0 = vpop.eup %3871  ;;  %v521_v35 = vpop.xlane.xlu1 %520  ;;  %3593 = vmatprep.mubr.bf16.mxu0 %v1251_v8  ;;  %3673 = vmatprep.mubr.bf16.mxu1 %v1251_v8  ;;  %v1196_v38 = vadd.f32 %v4986_v31, %v1125_v56  ;;  %v1056_v33 = vmul.f32 %v3870_v41, %v4743_v6 }
 0x1c9   : > { %v523_v59 = vpop.xlane.xlu0 %522  ;;  %3881 = vrsqrt.f32 %v934_v32  ;;  %v588_v15 = vmul.f32 0.0078125, %v521_v35  ;;  %v1057_v25 = vmul.f32 %v3872_v0, %v4750_v17  ;;  %v1197_v6 = vadd.f32 %v4986_v31, %v1126_v4  ;;  %v5467_v32 = vld [vmem:[#allocation28_spill] sm:$0xff]  ;;  %v5468_v4 = vld [vmem:[#allocation29_spill] sm:$0xff] }
 0x1ca   : > { %v589_v46 = vmul.f32 0.0078125, %v523_v59  ;;  %v715_v18 = vmul.f32 %v5033_v50, %v5033_v50  ;;  %v1252_v9 = vpack.c.bf16 %v1196_v38, %v1195_v40  ;;  %v1127_v3 = vmul.f32 %v4979_v49, %v1056_v33 }
 0x1cb   : > { %v3874_v60 = vpop.eup %3873  ;;  %v5044_v43 = vsub.f32 %v4787_v63, %v588_v15  ;;  %v1128_v17 = vmul.f32 %v4979_v49, %v1057_v25 }
 0x1cc   : > { %v5047_v2 = vsub.f32 %v4790_v20, %v589_v46  ;;  %839 = vadd.xlane.f32.xlu0 %v715_v18  ;;  %v3876_v52 = vpop.eup %3875  ;;  %v525_v37 = vpop.xlane.xlu1 %524  ;;  %3594 = vmatmul.mubr.bf16.gmra.mrb[12].mxu0 %v1252_v9  ;;  %v1198_v39 = vadd.f32 %v4986_v31, %v1127_v3  ;;  %v1058_v44 = vmul.f32 %v3874_v60, %v4753_v12 }
 0x1cd   : > { %3674 = vmatmul.mubr.bf16.gmra.mrb[12].mxu1 %v1252_v9  ;;  %v768_v34 = vpop.xlane.xlu0 %767  ;;  %v590_v54 = vmul.f32 0.0078125, %v525_v37  ;;  %v716_v20 = vmul.f32 %v5044_v43, %v5044_v43  ;;  %v1059_v61 = vmul.f32 %v3876_v52, %v5466_v45  ;;  %v1199_v48 = vadd.f32 %v4986_v31, %v1128_v17  ;;  %v5469_v52 = vld [vmem:[#allocation30_spill] sm:$0xff] }
 0x1ce   : > { %v871_v63 = vmul.f32 0.0078125, %v768_v34  ;;  %v717_v51 = vmul.f32 %v5047_v2, %v5047_v2  ;;  %v1253_v21 = vpack.c.bf16 %v1198_v39, %v1197_v6  ;;  %v1129_v11 = vmul.f32 %v4979_v49, %v1058_v44 }
 0x1cf   : > { %v3878_v13 = vpop.eup %3877  ;;  %v5060_v27 = vsub.f32 %v4803_v23, %v590_v54  ;;  %841 = vadd.xlane.f32.xlu1 %v716_v20  ;;  %v1130_v0 = vmul.f32 %v4979_v49, %v1059_v61 }
 0x1d0   : > { %v935_v12 = vadd.f32 1e-05, %v871_v63  ;;  %843 = vadd.xlane.f32.xlu0 %v717_v51  ;;  %v3880_v8 = vpop.eup %3879  ;;  %v770_v56 = vpop.xlane.xlu1 %769  ;;  %3597 = vmatprep.mubr.bf16.mxu0 %v1253_v21  ;;  %v1200_v41 = vadd.f32 %v4986_v31, %v1129_v11  ;;  %v1060_v40 = vmul.f32 %v3878_v13, %v5467_v32  ;;  %v5470_v32 = vld [vmem:[#allocation31_spill] sm:$0xff] }
 0x1d1   : > { %3677 = vmatprep.mubr.bf16.mxu1 %v1253_v21  ;;  %v772_v47 = vpop.xlane.xlu0 %771  ;;  %v872_v35 = vmul.f32 0.0078125, %v770_v56  ;;  %v718_v59 = vmul.f32 %v5060_v27, %v5060_v27  ;;  %v1061_v15 = vmul.f32 %v3880_v8, %v5468_v4  ;;  %v1201_v3 = vadd.f32 %v4986_v31, %v1130_v0 }
 0x1d2   : > { %3883 = vrsqrt.f32 %v935_v12  ;;  %v873_v23 = vmul.f32 0.0078125, %v772_v47  ;;  %v1254_v38 = vpack.c.bf16 %v1200_v41, %v1199_v48  ;;  %v1131_v33 = vmul.f32 %v4979_v49, %v1060_v40 }
 0x1d3   : > { %v3882_v46 = vpop.eup %3881  ;;  %v936_v18 = vadd.f32 1e-05, %v872_v35  ;;  %845 = vadd.xlane.f32.xlu1 %v718_v59  ;;  %v1132_v34 = vmul.f32 %v4979_v49, %v1061_v15 }
 0x1d4   : > { %v937_v9 = vadd.f32 1e-05, %v873_v23  ;;  %v774_v25 = vpop.xlane.xlu1 %773  ;;  %3598 = vmatmul.mubr.bf16.gmra.mrb[16].mxu0 %v1254_v38  ;;  %v1202_v6 = vadd.f32 %v4986_v31, %v1131_v33  ;;  %v1062_v37 = vmul.f32 %v3882_v46, %v5469_v52 }
 0x1d5   : > { %3678 = vmatmul.mubr.bf16.gmra.mrb[16].mxu1 %v1254_v38  ;;  %v776_v60 = vpop.xlane.xlu0 %775  ;;  %3885 = vrsqrt.f32 %v936_v18  ;;  %v874_v39 = vmul.f32 0.0078125, %v774_v25  ;;  %v1203_v11 = vadd.f32 %v4986_v31, %v1132_v34 }
 0x1d6   : > { %v875_v44 = vmul.f32 0.0078125, %v776_v60  ;;  %3887 = vrsqrt.f32 %v937_v9  ;;  %v1255_v17 = vpack.c.bf16 %v1202_v6, %v1201_v3  ;;  %v1133_v54 = vmul.f32 %v4979_v49, %v1062_v37 }
 0x1d7   : > { %v938_v63 = vadd.f32 1e-05, %v874_v39 }
 0x1d8   : > { %v939_v20 = vadd.f32 1e-05, %v875_v44  ;;  %v778_v51 = vpop.xlane.xlu1 %777  ;;  %3601 = vmatprep.mubr.bf16.mxu0 %v1255_v17  ;;  %3681 = vmatprep.mubr.bf16.mxu1 %v1255_v17  ;;  %v1204_v45 = vadd.f32 %v4986_v31, %v1133_v54 }
 0x1d9   : > { %v780_v21 = vpop.xlane.xlu0 %779  ;;  %3889 = vrsqrt.f32 %v938_v63  ;;  %v876_v61 = vmul.f32 0.0078125, %v778_v51 }
 0x1da   : > { %v877_v13 = vmul.f32 0.0078125, %v780_v21  ;;  %3891 = vrsqrt.f32 %v939_v20  ;;  %v1256_v12 = vpack.c.bf16 %v1204_v45, %v1203_v11 }
 0x1db   : > { %v940_v8 = vadd.f32 1e-05, %v876_v61 }
 0x1dc   : > { %v3884_v48 = vpop.eup %3883  ;;  %v941_v56 = vadd.f32 1e-05, %v877_v13  ;;  %v782_v47 = vpop.xlane.xlu1 %781  ;;  %3602 = vmatmul.mubr.bf16.gmra.mrb[20].mxu0 %v1256_v12 }
 0x1dd   : > { %3682 = vmatmul.mubr.bf16.gmra.mrb[20].mxu1 %v1256_v12  ;;  %v784_v41 = vpop.xlane.xlu0 %783  ;;  %v1063_v40 = vmul.f32 %v3884_v48, %v5470_v32  ;;  %3893 = vrsqrt.f32 %v940_v8  ;;  %v878_v0 = vmul.f32 0.0078125, %v782_v47 }
 0x1de   : > { %v879_v35 = vmul.f32 0.0078125, %v784_v41  ;;  %3895 = vrsqrt.f32 %v941_v56 }
 0x1df   : > { %v3886_v23 = vpop.eup %3885  ;;  %v942_v59 = vadd.f32 1e-05, %v878_v0  ;;  %v1134_v18 = vmul.f32 %v4979_v49, %v1063_v40 }
 0x1e0   : > { %v943_v38 = vadd.f32 1e-05, %v879_v35  ;;  %v3888_v33 = vpop.eup %3887  ;;  %v786_v4 = vpop.xlane.xlu1 %785  ;;  %v1064_v46 = vmul.f32 %v3886_v23, %v4793_v10 }
 0x1e1   : > { %v788_v15 = vpop.xlane.xlu0 %787  ;;  %3897 = vrsqrt.f32 %v942_v59  ;;  %v880_v9 = vmul.f32 0.0078125, %v786_v4  ;;  %v1065_v25 = vmul.f32 %v3888_v33, %v4800_v24  ;;  %v1205_v10 = vadd.f32 %v4986_v31, %v1134_v18 }
 0x1e2   : > { %v881_v3 = vmul.f32 0.0078125, %v788_v15  ;;  %3899 = vrsqrt.f32 %v943_v38  ;;  %v1135_v60 = vmul.f32 %v4979_v49, %v1064_v46 }
 0x1e3   : > { %v3890_v6 = vpop.eup %3889  ;;  %v944_v52 = vadd.f32 1e-05, %v880_v9  ;;  %v1136_v34 = vmul.f32 %v4979_v49, %v1065_v25 }
 0x1e4   : > { %v945_v37 = vadd.f32 1e-05, %v881_v3  ;;  %v3892_v39 = vpop.eup %3891  ;;  %v790_v44 = vpop.xlane.xlu1 %789  ;;  %v1206_v54 = vadd.f32 %v4986_v31, %v1135_v60  ;;  %v1066_v63 = vmul.f32 %v3890_v6, %v4811_v1 }
 0x1e5   : > { %v792_v17 = vpop.xlane.xlu0 %791  ;;  %3901 = vrsqrt.f32 %v944_v52  ;;  %v882_v20 = vmul.f32 0.0078125, %v790_v44  ;;  %v1067_v11 = vmul.f32 %v3892_v39, %v4814_v26  ;;  %v1207_v12 = vadd.f32 %v4986_v31, %v1136_v34  ;;  %v5471_v26 = vld [vmem:[#allocation32_spill] sm:$0xff] }
 0x1e6   : > { %v883_v24 = vmul.f32 0.0078125, %v792_v17  ;;  %3903 = vrsqrt.f32 %v945_v37  ;;  %v1257_v51 = vpack.c.bf16 %v1206_v54, %v1205_v10  ;;  %v1137_v21 = vmul.f32 %v4979_v49, %v1066_v63 }
 0x1e7   : > { %v3894_v45 = vpop.eup %3893  ;;  %v946_v61 = vadd.f32 1e-05, %v882_v20  ;;  %v1138_v41 = vmul.f32 %v4979_v49, %v1067_v11 }
 0x1e8   : > { %v947_v13 = vadd.f32 1e-05, %v883_v24  ;;  %v3896_v48 = vpop.eup %3895  ;;  %v794_v8 = vpop.xlane.xlu1 %793  ;;  %3605 = vmatprep.mubr.bf16.mxu0 %v1257_v51  ;;  %3685 = vmatprep.mubr.bf16.mxu1 %v1257_v51  ;;  %v1208_v1 = vadd.f32 %v4986_v31, %v1137_v21  ;;  %v1068_v47 = vmul.f32 %v3894_v45, %v4817_v19 }
 0x1e9   : > { %v796_v56 = vpop.xlane.xlu0 %795  ;;  %3905 = vrsqrt.f32 %v946_v61  ;;  %v884_v32 = vmul.f32 0.0078125, %v794_v8  ;;  %v1069_v0 = vmul.f32 %v3896_v48, %v5471_v26  ;;  %v1209_v18 = vadd.f32 %v4986_v31, %v1138_v41 }
 0x1ea   : > { %v885_v40 = vmul.f32 0.0078125, %v796_v56  ;;  %3907 = vrsqrt.f32 %v947_v13  ;;  %v1258_v35 = vpack.c.bf16 %v1208_v1, %v1207_v12  ;;  %v1139_v23 = vmul.f32 %v4979_v49, %v1068_v47 }
 0x1eb   : > { %v3898_v59 = vpop.eup %3897  ;;  %v948_v38 = vadd.f32 1e-05, %v884_v32  ;;  %v1140_v4 = vmul.f32 %v4979_v49, %v1069_v0 }
 0x1ec   : > { %v949_v33 = vadd.f32 1e-05, %v885_v40  ;;  %v3900_v15 = vpop.eup %3899  ;;  %v798_v46 = vpop.xlane.xlu1 %797  ;;  %3606 = vmatmul.mubr.bf16.gmra.mrb[24].mxu0 %v1258_v35  ;;  %3686 = vmatmul.mubr.bf16.gmra.mrb[24].mxu1 %v1258_v35  ;;  %v1210_v9 = vadd.f32 %v4986_v31, %v1139_v23  ;;  %v1070_v3 = vmul.f32 %v3898_v59, %v4827_v7 }
 0x1ed   : > { %v800_v19 = vpop.xlane.xlu0 %799  ;;  %3909 = vrsqrt.f32 %v948_v38  ;;  %v886_v25 = vmul.f32 0.0078125, %v798_v46  ;;  %v1071_v37 = vmul.f32 %v3900_v15, %v4832_v30  ;;  %v1211_v17 = vadd.f32 %v4986_v31, %v1140_v4 }
 0x1ee   : > { %v887_v60 = vmul.f32 0.0078125, %v800_v19  ;;  %3911 = vrsqrt.f32 %v949_v33  ;;  %v1259_v6 = vpack.c.bf16 %v1210_v9, %v1209_v18  ;;  %v1141_v52 = vmul.f32 %v4979_v49, %v1070_v3 }
 0x1ef   : > { %v3902_v34 = vpop.eup %3901  ;;  %v950_v39 = vadd.f32 1e-05, %v886_v25  ;;  %v1142_v24 = vmul.f32 %v4979_v49, %v1071_v37 }
 0x1f0   : > { %v951_v44 = vadd.f32 1e-05, %v887_v60  ;;  %v3904_v10 = vpop.eup %3903  ;;  %v802_v54 = vpop.xlane.xlu1 %801  ;;  %3609 = vmatprep.mubr.bf16.mxu0 %v1259_v6  ;;  %3689 = vmatprep.mubr.bf16.mxu1 %v1259_v6  ;;  %v1212_v7 = vadd.f32 %v4986_v31, %v1141_v52  ;;  %v1072_v20 = vmul.f32 %v3902_v34, %v4839_v14 }
 0x1f1   : > { %v804_v63 = vpop.xlane.xlu0 %803  ;;  %3913 = vrsqrt.f32 %v950_v39  ;;  %v888_v51 = vmul.f32 0.0078125, %v802_v54  ;;  %v1073_v30 = vmul.f32 %v3904_v10, %v4842_v58  ;;  %v1213_v1 = vadd.f32 %v4986_v31, %v1142_v24 }
 0x1f2   : > { %v889_v21 = vmul.f32 0.0078125, %v804_v63  ;;  %3915 = vrsqrt.f32 %v951_v44  ;;  %v1260_v11 = vpack.c.bf16 %v1212_v7, %v1211_v17  ;;  %v1143_v45 = vmul.f32 %v4979_v49, %v1072_v20 }
 0x1f3   : > { %v3906_v61 = vpop.eup %3905  ;;  %v952_v13 = vadd.f32 1e-05, %v888_v51  ;;  %v1144_v48 = vmul.f32 %v4979_v49, %v1073_v30 }
 0x1f4   : > { %v953_v12 = vadd.f32 1e-05, %v889_v21  ;;  %v3908_v8 = vpop.eup %3907  ;;  %v806_v56 = vpop.xlane.xlu1 %805  ;;  %3610 = vmatmul.mubr.bf16.gmra.mrb[28].mxu0 %v1260_v11  ;;  %3690 = vmatmul.mubr.bf16.gmra.mrb[28].mxu1 %v1260_v11  ;;  %v1214_v47 = vadd.f32 %v4986_v31, %v1143_v45  ;;  %v1074_v58 = vmul.f32 %v3906_v61, %v4847_v28 }
 0x1f5   : > { %v808_v14 = vpop.xlane.xlu0 %807  ;;  %3917 = vrsqrt.f32 %v952_v13  ;;  %v890_v41 = vmul.f32 0.0078125, %v806_v56  ;;  %v1075_v0 = vmul.f32 %v3908_v8, %v4850_v22  ;;  %v1215_v38 = vadd.f32 %v4986_v31, %v1144_v48 }
 0x1f6   : > { %v891_v32 = vmul.f32 0.0078125, %v808_v14  ;;  %3919 = vrsqrt.f32 %v953_v12  ;;  %v1261_v40 = vpack.c.bf16 %v1214_v47, %v1213_v1  ;;  %v1145_v26 = vmul.f32 %v4979_v49, %v1074_v58 }
 0x1f7   : > { %v3910_v35 = vpop.eup %3909  ;;  %v954_v23 = vadd.f32 1e-05, %v890_v41  ;;  %v1146_v19 = vmul.f32 %v4979_v49, %v1075_v0 }
 0x1f8   : > { %v955_v59 = vadd.f32 1e-05, %v891_v32  ;;  %v3912_v33 = vpop.eup %3911  ;;  %v810_v4 = vpop.xlane.xlu1 %809  ;;  %3613 = vmatprep.mubr.bf16.mxu0 %v1261_v40  ;;  %3693 = vmatprep.mubr.bf16.mxu1 %v1261_v40  ;;  %v1216_v28 = vadd.f32 %v4986_v31, %v1145_v26  ;;  %v1076_v46 = vmul.f32 %v3910_v35, %v4857_v53 }
 0x1f9   : > { %v812_v15 = vpop.xlane.xlu0 %811  ;;  %3921 = vrsqrt.f32 %v954_v23  ;;  %v892_v18 = vmul.f32 0.0078125, %v810_v4  ;;  %v1077_v22 = vmul.f32 %v3912_v33, %v4862_v36  ;;  %v1217_v44 = vadd.f32 %v4986_v31, %v1146_v19 }
 0x1fa   : > { %v893_v9 = vmul.f32 0.0078125, %v812_v15  ;;  %3923 = vrsqrt.f32 %v955_v59  ;;  %v1262_v3 = vpack.c.bf16 %v1216_v28, %v1215_v38  ;;  %v1147_v25 = vmul.f32 %v4979_v49, %v1076_v46 }
 0x1fb   : > { %v3914_v60 = vpop.eup %3913  ;;  %v956_v6 = vadd.f32 1e-05, %v892_v18  ;;  %v1148_v37 = vmul.f32 %v4979_v49, %v1077_v22 }
 0x1fc   : > { %v957_v52 = vadd.f32 1e-05, %v893_v9  ;;  %v3916_v34 = vpop.eup %3915  ;;  %v814_v39 = vpop.xlane.xlu1 %813  ;;  %3614 = vmatmul.mubr.bf16.gmra.mrb[32].mxu0 %v1262_v3  ;;  %3694 = vmatmul.mubr.bf16.gmra.mrb[32].mxu1 %v1262_v3  ;;  %v1218_v17 = vadd.f32 %v4986_v31, %v1147_v25  ;;  %v1078_v36 = vmul.f32 %v3914_v60, %v4869_v5 }
 0x1fd   : > { %v816_v53 = vpop.xlane.xlu0 %815  ;;  %3925 = vrsqrt.f32 %v956_v6  ;;  %v894_v10 = vmul.f32 0.0078125, %v814_v39  ;;  %v1079_v20 = vmul.f32 %v3916_v34, %v4872_v62  ;;  %v1219_v30 = vadd.f32 %v4986_v31, %v1148_v37 }
 0x1fe   : > { %v895_v54 = vmul.f32 0.0078125, %v816_v53  ;;  %3927 = vrsqrt.f32 %v957_v52  ;;  %v1263_v63 = vpack.c.bf16 %v1218_v17, %v1217_v44  ;;  %v1149_v7 = vmul.f32 %v4979_v49, %v1078_v36 }
 0x1ff   : > { %v3918_v24 = vpop.eup %3917  ;;  %v958_v51 = vadd.f32 1e-05, %v894_v10  ;;  %v1150_v12 = vmul.f32 %v4979_v49, %v1079_v20 }
 0x200   : > { %v959_v21 = vadd.f32 1e-05, %v895_v54  ;;  %v3920_v11 = vpop.eup %3919  ;;  %v818_v45 = vpop.xlane.xlu1 %817  ;;  %3617 = vmatprep.mubr.bf16.mxu0 %v1263_v63  ;;  %3697 = vmatprep.mubr.bf16.mxu1 %v1263_v63  ;;  %v1220_v5 = vadd.f32 %v4986_v31, %v1149_v7  ;;  %v1080_v13 = vmul.f32 %v3918_v24, %v4877_v29  ;;  %v5473_v63 = vld [vmem:[#allocation34_spill] sm:$0xff] }
 0x201   : > { %v820_v61 = vpop.xlane.xlu0 %819  ;;  %3929 = vrsqrt.f32 %v958_v51  ;;  %v896_v48 = vmul.f32 0.0078125, %v818_v45  ;;  %v1081_v62 = vmul.f32 %v3920_v11, %v4880_v16  ;;  %v1221_v26 = vadd.f32 %v4986_v31, %v1150_v12 }
 0x202   : > { %v897_v8 = vmul.f32 0.0078125, %v820_v61  ;;  %3931 = vrsqrt.f32 %v959_v21  ;;  %v1264_v56 = vpack.c.bf16 %v1220_v5, %v1219_v30  ;;  %v1151_v14 = vmul.f32 %v4979_v49, %v1080_v13  ;;  %v5474_v30 = vld [vmem:[#allocation35_spill] sm:$0xff] }
 0x203   : > { %v3922_v1 = vpop.eup %3921  ;;  %v960_v47 = vadd.f32 1e-05, %v896_v48  ;;  %v1152_v41 = vmul.f32 %v4979_v49, %v1081_v62 }
 0x204   : > { %v961_v58 = vadd.f32 1e-05, %v897_v8  ;;  %v3924_v32 = vpop.eup %3923  ;;  %v822_v40 = vpop.xlane.xlu1 %821  ;;  %3618 = vmatmul.mubr.bf16.gmra.mrb[36].mxu0 %v1264_v56  ;;  %3698 = vmatmul.mubr.bf16.gmra.mrb[36].mxu1 %v1264_v56  ;;  %v1222_v0 = vadd.f32 %v4986_v31, %v1151_v14  ;;  %v1082_v16 = vmul.f32 %v3922_v1, %v4887_v57  ;;  %v5475_v56 = vld [vmem:[#allocation36_spill] sm:$0xff] }
 0x205   : > { %v824_v29 = vpop.xlane.xlu0 %823  ;;  %3933 = vrsqrt.f32 %v960_v47  ;;  %v898_v35 = vmul.f32 0.0078125, %v822_v40  ;;  %v1083_v33 = vmul.f32 %v3924_v32, %v4892_v42  ;;  %v1223_v46 = vadd.f32 %v4986_v31, %v1152_v41  ;;  %v5472_v42 = vld [vmem:[#allocation33_spill] sm:$0xff] }
 0x206   : > { %v899_v23 = vmul.f32 0.0078125, %v824_v29  ;;  %3935 = vrsqrt.f32 %v961_v58  ;;  %v1265_v59 = vpack.c.bf16 %v1222_v0, %v1221_v26  ;;  %v1153_v38 = vmul.f32 %v4979_v49, %v1082_v16  ;;  %v5476_v41 = vld [vmem:[#allocation37_spill] sm:$0xff] }
 0x207   : > { %v3926_v4 = vpop.eup %3925  ;;  %v962_v15 = vadd.f32 1e-05, %v898_v35  ;;  %v1154_v3 = vmul.f32 %v4979_v49, %v1083_v33  ;;  %v5477_v33 = vld [vmem:[#allocation16_spill] sm:$0xff] }
 0x208   : > { %v963_v28 = vadd.f32 1e-05, %v899_v23  ;;  %v3928_v19 = vpop.eup %3927  ;;  %v826_v18 = vpop.xlane.xlu1 %825  ;;  %3621 = vmatprep.mubr.bf16.mxu0 %v1265_v59  ;;  %3701 = vmatprep.mubr.bf16.mxu1 %v1265_v59  ;;  %v1224_v57 = vadd.f32 %v4986_v31, %v1153_v38  ;;  %v1084_v22 = vmul.f32 %v3926_v4, %v4899_v55 }
 0x209   : > { %v828_v9 = vpop.xlane.xlu0 %827  ;;  %3937 = vrsqrt.f32 %v962_v15  ;;  %v900_v25 = vmul.f32 0.0078125, %v826_v18  ;;  %v1085_v6 = vmul.f32 %v3928_v19, %v5472_v42  ;;  %v1225_v10 = vadd.f32 %v4986_v31, %v1154_v3 }
 0x20a   : > { %v901_v60 = vmul.f32 0.0078125, %v828_v9  ;;  %3939 = vrsqrt.f32 %v963_v28  ;;  %v1266_v52 = vpack.c.bf16 %v1224_v57, %v1223_v46  ;;  %v1155_v37 = vmul.f32 %v4979_v49, %v1084_v22  ;;  %v5478_v46 = vld [vmem:[#allocation17_spill] sm:$0xff] }
 0x20b   : > { %v3930_v34 = vpop.eup %3929  ;;  %v964_v39 = vadd.f32 1e-05, %v900_v25  ;;  %v1156_v44 = vmul.f32 %v4979_v49, %v1085_v6  ;;  %v5479_v6 = vld [vmem:[#allocation18_spill] sm:$0xff] }
 0x20c   : > { %v965_v53 = vadd.f32 1e-05, %v901_v60  ;;  %v3932_v17 = vpop.eup %3931  ;;  %v830_v36 = vpop.xlane.xlu1 %829  ;;  %3622 = vmatmul.mubr.bf16.gmra.mrb[40].mxu0 %v1266_v52  ;;  %3702 = vmatmul.mubr.bf16.gmra.mrb[40].mxu1 %v1266_v52  ;;  %v1226_v54 = vadd.f32 %v4986_v31, %v1155_v37  ;;  %v1086_v7 = vmul.f32 %v3930_v34, %v5473_v63  ;;  %v5480_v37 = vld [vmem:[#allocation19_spill] sm:$0xff] }
 0x20d   : > { %v832_v55 = vpop.xlane.xlu0 %831  ;;  %3941 = vrsqrt.f32 %v964_v39  ;;  %v902_v20 = vmul.f32 0.0078125, %v830_v36  ;;  %v1087_v11 = vmul.f32 %v3932_v17, %v5474_v30  ;;  %v1227_v13 = vadd.f32 %v4986_v31, %v1156_v44 }
 0x20e   : > { %v903_v24 = vmul.f32 0.0078125, %v832_v55  ;;  %3943 = vrsqrt.f32 %v965_v53  ;;  %v1267_v51 = vpack.c.bf16 %v1226_v54, %v1225_v10  ;;  %v1157_v21 = vmul.f32 %v4979_v49, %v1086_v7  ;;  %v5168_v53 = vld [vmem:[%s5371_s1] ss:$0 sm:$0xff] }
 0x20f   : > { %v3934_v45 = vpop.eup %3933  ;;  %v966_v61 = vadd.f32 1e-05, %v902_v20  ;;  %v1158_v1 = vmul.f32 %v4979_v49, %v1087_v11  ;;  %v5175_v55 = vld [vmem:[%s5372_s2] ss:$0 sm:$0xff]  ;;  %v5482_v20 = vld [vmem:[#allocation21_spill] sm:$0xff] }
 0x210   : > { %v967_v5 = vadd.f32 1e-05, %v903_v24  ;;  %v3936_v12 = vpop.eup %3935  ;;  %v834_v48 = vpop.xlane.xlu1 %833  ;;  %3625 = vmatprep.mubr.bf16.mxu0 %v1267_v51  ;;  %3705 = vmatprep.mubr.bf16.mxu1 %v1267_v51  ;;  %v1228_v62 = vadd.f32 %v4986_v31, %v1157_v21  ;;  %v1088_v14 = vmul.f32 %v3934_v45, %v5475_v56  ;;  %v5481_v54 = vld [vmem:[#allocation20_spill] sm:$0xff] }
 0x211   : > { %v836_v8 = vpop.xlane.xlu0 %835  ;;  %3945 = vrsqrt.f32 %v966_v61  ;;  %v904_v47 = vmul.f32 0.0078125, %v834_v48  ;;  %v1089_v32 = vmul.f32 %v3936_v12, %v5476_v41  ;;  %v1229_v35 = vadd.f32 %v4986_v31, %v1158_v1  ;;  %v5484_v12 = vld [vmem:[#allocation23_spill] sm:$0xff] }
 0x212   : > { %v905_v58 = vmul.f32 0.0078125, %v836_v8  ;;  %3947 = vrsqrt.f32 %v967_v5  ;;  %v1268_v40 = vpack.c.bf16 %v1228_v62, %v1227_v13  ;;  %v1159_v29 = vmul.f32 %v4979_v49, %v1088_v14  ;;  %v5483_v5 = vld [vmem:[#allocation22_spill] sm:$0xff] }
 0x213   : > { %v3938_v26 = vpop.eup %3937  ;;  %v968_v0 = vadd.f32 1e-05, %v904_v47  ;;  %v1160_v15 = vmul.f32 %v4979_v49, %v1089_v32  ;;  %v5485_v47 = vld [vmem:[#allocation24_spill] sm:$0xff] }
 0x214   : > { %v969_v16 = vadd.f32 1e-05, %v905_v58  ;;  %v3940_v23 = vpop.eup %3939  ;;  %v838_v59 = vpop.xlane.xlu1 %837  ;;  %3626 = vmatmul.mubr.bf16.gmra.mrb[44].mxu0 %v1268_v40  ;;  %3706 = vmatmul.mubr.bf16.gmra.mrb[44].mxu1 %v1268_v40  ;;  %v1230_v38 = vadd.f32 %v4986_v31, %v1159_v29  ;;  %v1090_v4 = vmul.f32 %v3938_v26, %v5477_v33 }
 0x215   : > { %3949 = vrsqrt.f32 %v968_v0  ;;  %v906_v28 = vmul.f32 0.0078125, %v838_v59  ;;  %v1091_v19 = vmul.f32 %v3940_v23, %v5478_v46  ;;  %v1231_v60 = vadd.f32 %v4986_v31, %v1160_v15 }
 0x216   : > { %3951 = vrsqrt.f32 %v969_v16  ;;  %v1269_v18 = vpack.c.bf16 %v1230_v38, %v1229_v35  ;;  %v1161_v9 = vmul.f32 %v4979_v49, %v1090_v4 }
 0x217   : > { %v3942_v57 = vpop.eup %3941  ;;  %v970_v22 = vadd.f32 1e-05, %v906_v28  ;;  %v1162_v3 = vmul.f32 %v4979_v49, %v1091_v19 }
 0x218   : > { %v3944_v25 = vpop.eup %3943  ;;  %3629 = vmatprep.mubr.bf16.mxu0 %v1269_v18  ;;  %3709 = vmatprep.mubr.bf16.mxu1 %v1269_v18  ;;  %v1232_v42 = vadd.f32 %v4986_v31, %v1161_v9  ;;  %v1092_v52 = vmul.f32 %v3942_v57, %v5479_v6 }
 0x219   : > { %3953 = vrsqrt.f32 %v970_v22  ;;  %v1093_v34 = vmul.f32 %v3944_v25, %v5480_v37  ;;  %v1233_v17 = vadd.f32 %v4986_v31, %v1162_v3 }
 0x21a   : > { %v1270_v39 = vpack.c.bf16 %v1232_v42, %v1231_v60  ;;  %v1163_v49 = vmul.f32 %v5168_v53, %v1092_v52 }
 0x21b   : > { %v3946_v44 = vpop.eup %3945  ;;  %v1164_v7 = vmul.f32 %v5168_v53, %v1093_v34 }
 0x21c   : > { %v3948_v36 = vpop.eup %3947  ;;  %3630 = vmatmul.mubr.bf16.gmra.mrb[48].mxu0 %v1270_v39  ;;  %3710 = vmatmul.mubr.bf16.gmra.mrb[48].mxu1 %v1270_v39  ;;  %v1234_v10 = vadd.f32 %v5175_v55, %v1163_v49  ;;  %v1094_v63 = vmul.f32 %v3946_v44, %v5481_v54 }
 0x21d   : > { %v1095_v24 = vmul.f32 %v3948_v36, %v5482_v20  ;;  %v1235_v45 = vadd.f32 %v5175_v55, %v1164_v7 }
 0x21e   : > { %v1271_v51 = vpack.c.bf16 %v1234_v10, %v1233_v17  ;;  %v1165_v21 = vmul.f32 %v5168_v53, %v1094_v63 }
 0x21f   : > { %v3950_v31 = vpop.eup %3949  ;;  %v1166_v30 = vmul.f32 %v5168_v53, %v1095_v24 }
 0x220   : > { %v3952_v11 = vpop.eup %3951  ;;  %3633 = vmatprep.mubr.bf16.mxu0 %v1271_v51  ;;  %3713 = vmatprep.mubr.bf16.mxu1 %v1271_v51  ;;  %v1236_v61 = vadd.f32 %v5175_v55, %v1165_v21  ;;  %v1096_v13 = vmul.f32 %v3950_v31, %v5483_v5 }
 0x221   : > { %v1097_v48 = vmul.f32 %v3952_v11, %v5484_v12  ;;  %v1237_v14 = vadd.f32 %v5175_v55, %v1166_v30 }
 0x222   : > { %v1272_v8 = vpack.c.bf16 %v1236_v61, %v1235_v45  ;;  %v1167_v62 = vmul.f32 %v5168_v53, %v1096_v13 }
 0x223   : > { %v3954_v56 = vpop.eup %3953  ;;  %v1168_v41 = vmul.f32 %v5168_v53, %v1097_v48 }
 0x224   : > { %3634 = vmatmul.mubr.bf16.gmra.mrb[52].mxu0 %v1272_v8  ;;  %3714 = vmatmul.mubr.bf16.gmra.mrb[52].mxu1 %v1272_v8  ;;  %v1238_v1 = vadd.f32 %v5175_v55, %v1167_v62  ;;  %v1098_v58 = vmul.f32 %v3954_v56, %v5485_v47 }
 0x225   : > { %v1239_v29 = vadd.f32 %v5175_v55, %v1168_v41 }
 0x226   : > { %v1273_v32 = vpack.c.bf16 %v1238_v1, %v1237_v14  ;;  %v1169_v40 = vmul.f32 %v5168_v53, %v1098_v58 }
 0x228   : > { %3637 = vmatprep.mubr.bf16.mxu0 %v1273_v32  ;;  %3717 = vmatprep.mubr.bf16.mxu1 %v1273_v32  ;;  %v1240_v26 = vadd.f32 %v5175_v55, %v1169_v40 }
 0x22a   : > { %v1274_v0 = vpack.c.bf16 %v1240_v26, %v1239_v29 }
 0x22c   : > { %3638 = vmatmul.mubr.bf16.gmra.mrb[56].mxu0 %v1274_v0  ;;  %3718 = vmatmul.mubr.bf16.gmra.mrb[56].mxu1 %v1274_v0 }
 0x259   : > { %v840_v16 = vpop.xlane.xlu0 %839 }
 0x25a   : > { %v907_v35 = vmul.f32 0.0078125, %v840_v16 }
 0x25c   : > { %v971_v23 = vadd.f32 1e-05, %v907_v35  ;;  %v842_v59 = vpop.xlane.xlu1 %841 }
 0x25d   : > { %v844_v38 = vpop.xlane.xlu0 %843  ;;  %v908_v33 = vmul.f32 0.0078125, %v842_v59 }
 0x25e   : > { %3955 = vrsqrt.f32 %v971_v23  ;;  %v909_v4 = vmul.f32 0.0078125, %v844_v38 }
 0x25f   : > { %v972_v15 = vadd.f32 1e-05, %v908_v33 }
 0x260   : > { %v973_v28 = vadd.f32 1e-05, %v909_v4  ;;  %v846_v46 = vpop.xlane.xlu1 %845 }
 0x261   : > { %3957 = vrsqrt.f32 %v972_v15  ;;  %v910_v19 = vmul.f32 0.0078125, %v846_v46 }
 0x262   : > { %3959 = vrsqrt.f32 %v973_v28 }
 0x263   : > { %v974_v18 = vadd.f32 1e-05, %v910_v19 }
 0x265   : > { %3961 = vrsqrt.f32 %v974_v18 }
 0x268   : > { %v3956_v9 = vpop.eup %3955 }
 0x269   : > { %v1099_v57 = vmul.f32 %v3956_v9, %v5033_v50 }
 0x26b   : > { %v3958_v22 = vpop.eup %3957  ;;  %v1170_v60 = vmul.f32 %v5168_v53, %v1099_v57 }
 0x26c   : > { %v3960_v3 = vpop.eup %3959  ;;  %v1100_v25 = vmul.f32 %v3958_v22, %v5044_v43 }
 0x26d   : > { %v1101_v42 = vmul.f32 %v3960_v3, %v5047_v2  ;;  %v1241_v37 = vadd.f32 %v5175_v55, %v1170_v60 }
 0x26e   : > { %v1171_v6 = vmul.f32 %v5168_v53, %v1100_v25 }
 0x26f   : > { %v3962_v52 = vpop.eup %3961  ;;  %v1172_v50 = vmul.f32 %v5168_v53, %v1101_v42 }
 0x270   : > { %v1242_v34 = vadd.f32 %v5175_v55, %v1171_v6  ;;  %v1102_v39 = vmul.f32 %v3962_v52, %v5060_v27 }
 0x271   : > { %v1243_v43 = vadd.f32 %v5175_v55, %v1172_v50 }
 0x272   : > { %v1275_v49 = vpack.c.bf16 %v1242_v34, %v1241_v37  ;;  %v1173_v44 = vmul.f32 %v5168_v53, %v1102_v39 }
 0x274   : > { %3641 = vmatprep.mubr.bf16.mxu0 %v1275_v49  ;;  %3721 = vmatprep.mubr.bf16.mxu1 %v1275_v49  ;;  %v1244_v2 = vadd.f32 %v5175_v55, %v1173_v44 }
 0x276   : > { %v1276_v17 = vpack.c.bf16 %v1244_v2, %v1243_v43 }
 0x278   : > { %3642 = vmatmul.mubr.bf16.gmra.mrb[60].mxu0 %v1276_v17  ;;  %3722 = vmatmul.mubr.bf16.gmra.mrb[60].mxu1 %v1276_v17 }
 0x287   : > { %v3583_v36 = vpop.f32.mrb[0].mxu0  ;;  %v3663_v10 = vpop.f32.mrb[0].mxu1 }
 0x288   : > { %v1375_v54 = vpop.f32.mrb[1].mxu0  ;;  %v2048_v63 = vpop.f32.mrb[1].mxu1 }
 0x289   : > { %v3584_v27 = vpop.f32.mrb[2].mxu0  ;;  %v3664_v7 = vpop.f32.mrb[2].mxu1 }
 0x28a   : > { %v3111_v20 = vpack.c.bf16 %v3584_v27, %v3583_v36  ;;  %v3271_v24 = vpack.c.bf16 %v3664_v7, %v3663_v10  ;;  %v1378_v51 = vpop.f32.mrb[3].mxu0  ;;  %v2051_v53 = vpop.f32.mrb[3].mxu1 }
 0x28b   : > { %v3106_v21 = vpack.c.bf16 %v1378_v51, %v1375_v54  ;;  %v3266_v31 = vpack.c.bf16 %v2051_v53, %v2048_v63 }
 0x28c   : > { %3423 = vst [vmem:[%s5208_s17 + $0x8] sm:$0xff] %v3111_v20   ;;  %3454 = vst [vmem:[%s5211_s10 + $0x8] sm:$0xff] %v3271_v24  }
 0x28d   : > { %3107 = vst [vmem:[%s5208_s17] sm:$0xff] %v3106_v21   ;;  %3267 = vst [vmem:[%s5211_s10] sm:$0xff] %v3266_v31  }
 0x28f   : > { %v3587_v55 = vpop.f32.mrb[4].mxu0  ;;  %v3667_v30 = vpop.f32.mrb[4].mxu1 }
 0x290   : > { %v1391_v11 = vpop.f32.mrb[5].mxu0  ;;  %v2064_v45 = vpop.f32.mrb[5].mxu1 }
 0x291   : > { %v3588_v61 = vpop.f32.mrb[6].mxu0  ;;  %v3668_v5 = vpop.f32.mrb[6].mxu1 }
 0x292   : > { %v3121_v13 = vpack.c.bf16 %v3588_v61, %v3587_v55  ;;  %v3281_v12 = vpack.c.bf16 %v3668_v5, %v3667_v30  ;;  %v1394_v48 = vpop.f32.mrb[7].mxu0  ;;  %v2067_v8 = vpop.f32.mrb[7].mxu1 }
 0x293   : > { %v3116_v62 = vpack.c.bf16 %v1394_v48, %v1391_v11  ;;  %v3276_v56 = vpack.c.bf16 %v2067_v8, %v2064_v45 }
 0x294   : > { %3425 = vst [vmem:[%s5208_s17 + $0x18] sm:$0xff] %v3121_v13   ;;  %3456 = vst [vmem:[%s5211_s10 + $0x18] sm:$0xff] %v3281_v12  }
 0x295   : > { %3424 = vst [vmem:[%s5208_s17 + $0x10] sm:$0xff] %v3116_v62   ;;  %3455 = vst [vmem:[%s5211_s10 + $0x10] sm:$0xff] %v3276_v56  }
 0x297   : > { %v3591_v14 = vpop.f32.mrb[8].mxu0  ;;  %v3671_v1 = vpop.f32.mrb[8].mxu1 }
 0x298   : > { %v1407_v47 = vpop.f32.mrb[9].mxu0  ;;  %v2080_v58 = vpop.f32.mrb[9].mxu1 }
 0x299   : > { %v3592_v41 = vpop.f32.mrb[10].mxu0  ;;  %v3672_v32 = vpop.f32.mrb[10].mxu1 }
 0x29a   : > { %v3131_v40 = vpack.c.bf16 %v3592_v41, %v3591_v14  ;;  %v3291_v29 = vpack.c.bf16 %v3672_v32, %v3671_v1  ;;  %v1410_v26 = vpop.f32.mrb[11].mxu0  ;;  %v2083_v0 = vpop.f32.mrb[11].mxu1 }
 0x29b   : > { %v3126_v16 = vpack.c.bf16 %v1410_v26, %v1407_v47  ;;  %v3286_v35 = vpack.c.bf16 %v2083_v0, %v2080_v58 }
 0x29c   : > { %3427 = vst [vmem:[%s5208_s17 + $0x28] sm:$0xff] %v3131_v40   ;;  %3458 = vst [vmem:[%s5211_s10 + $0x28] sm:$0xff] %v3291_v29  }
 0x29d   : > { %3426 = vst [vmem:[%s5208_s17 + $0x20] sm:$0xff] %v3126_v16   ;;  %3457 = vst [vmem:[%s5211_s10 + $0x20] sm:$0xff] %v3286_v35  }
 0x29f   : > { %v3595_v23 = vpop.f32.mrb[12].mxu0 }
 0x2a0   : > { %v3675_v59 = vpop.f32.mrb[12].mxu1  ;;  %v1423_v38 = vpop.f32.mrb[13].mxu0 }
 0x2a1   : > { %v2096_v33 = vpop.f32.mrb[13].mxu1  ;;  %v3596_v4 = vpop.f32.mrb[14].mxu0 }
 0x2a2   : > { %v3676_v15 = vpop.f32.mrb[14].mxu1  ;;  %v3141_v28 = vpack.c.bf16 %v3596_v4, %v3595_v23  ;;  %v1426_v19 = vpop.f32.mrb[15].mxu0 }
 0x2a3   : > { %v3301_v46 = vpack.c.bf16 %v3676_v15, %v3675_v59  ;;  %v2099_v18 = vpop.f32.mrb[15].mxu1  ;;  %v3136_v9 = vpack.c.bf16 %v1426_v19, %v1423_v38 }
 0x2a4   : > { %v3296_v57 = vpack.c.bf16 %v2099_v18, %v2096_v33  ;;  %3429 = vst [vmem:[%s5208_s17 + $0x38] sm:$0xff] %v3141_v28  }
 0x2a5   : > { %3460 = vst [vmem:[%s5211_s10 + $0x38] sm:$0xff] %v3301_v46   ;;  %3428 = vst [vmem:[%s5208_s17 + $0x30] sm:$0xff] %v3136_v9  }
 0x2a6   : > { %3459 = vst [vmem:[%s5211_s10 + $0x30] sm:$0xff] %v3296_v57  }
 0x2a7   : > { %v3599_v22 = vpop.f32.mrb[16].mxu0 }
 0x2a8   : > { %v3679_v3 = vpop.f32.mrb[16].mxu1  ;;  %v1439_v25 = vpop.f32.mrb[17].mxu0 }
 0x2a9   : > { %v2112_v60 = vpop.f32.mrb[17].mxu1  ;;  %v3600_v42 = vpop.f32.mrb[18].mxu0 }
 0x2aa   : > { %v3680_v6 = vpop.f32.mrb[18].mxu1  ;;  %v3151_v52 = vpack.c.bf16 %v3600_v42, %v3599_v22  ;;  %v1442_v34 = vpop.f32.mrb[19].mxu0 }
 0x2ab   : > { %v3311_v37 = vpack.c.bf16 %v3680_v6, %v3679_v3  ;;  %v2115_v39 = vpop.f32.mrb[19].mxu1  ;;  %v3146_v50 = vpack.c.bf16 %v1442_v34, %v1439_v25 }
 0x2ac   : > { %v3306_v49 = vpack.c.bf16 %v2115_v39, %v2112_v60  ;;  %3431 = vst [vmem:[%s5208_s17 + $0x48] sm:$0xff] %v3151_v52  }
 0x2ad   : > { %3462 = vst [vmem:[%s5211_s10 + $0x48] sm:$0xff] %v3311_v37   ;;  %3430 = vst [vmem:[%s5208_s17 + $0x40] sm:$0xff] %v3146_v50  }
 0x2ae   : > { %3461 = vst [vmem:[%s5211_s10 + $0x40] sm:$0xff] %v3306_v49  }
 0x2af   : > { %v3603_v44 = vpop.f32.mrb[20].mxu0 }
 0x2b0   : > { %v3683_v43 = vpop.f32.mrb[20].mxu1  ;;  %v1455_v2 = vpop.f32.mrb[21].mxu0 }
 0x2b1   : > { %v2128_v17 = vpop.f32.mrb[21].mxu1  ;;  %v3604_v36 = vpop.f32.mrb[22].mxu0 }
 0x2b2   : > { %v3684_v10 = vpop.f32.mrb[22].mxu1  ;;  %v3161_v54 = vpack.c.bf16 %v3604_v36, %v3603_v44  ;;  %v1458_v27 = vpop.f32.mrb[23].mxu0 }
 0x2b3   : > { %v3321_v63 = vpack.c.bf16 %v3684_v10, %v3683_v43  ;;  %v2131_v7 = vpop.f32.mrb[23].mxu1  ;;  %v3156_v20 = vpack.c.bf16 %v1458_v27, %v1455_v2 }
 0x2b4   : > { %v3316_v24 = vpack.c.bf16 %v2131_v7, %v2128_v17  ;;  %3433 = vst [vmem:[%s5208_s17 + $0x58] sm:$0xff] %v3161_v54  }
 0x2b5   : > { %3464 = vst [vmem:[%s5211_s10 + $0x58] sm:$0xff] %v3321_v63   ;;  %3432 = vst [vmem:[%s5208_s17 + $0x50] sm:$0xff] %v3156_v20  }
 0x2b6   : > { %3463 = vst [vmem:[%s5211_s10 + $0x50] sm:$0xff] %v3316_v24  }
 0x2bf   : > { %v3607_v51 = vpop.f32.mrb[24].mxu0  ;;  %v3687_v53 = vpop.f32.mrb[24].mxu1 }
 0x2c0   : > { %v1471_v21 = vpop.f32.mrb[25].mxu0  ;;  %v2144_v31 = vpop.f32.mrb[25].mxu1 }
 0x2c1   : > { %v3608_v55 = vpop.f32.mrb[26].mxu0  ;;  %v3688_v30 = vpop.f32.mrb[26].mxu1 }
 0x2c2   : > { %v3171_v11 = vpack.c.bf16 %v3608_v55, %v3607_v51  ;;  %v3331_v45 = vpack.c.bf16 %v3688_v30, %v3687_v53  ;;  %v1474_v61 = vpop.f32.mrb[27].mxu0  ;;  %v2147_v5 = vpop.f32.mrb[27].mxu1 }
 0x2c3   : > { %v3166_v13 = vpack.c.bf16 %v1474_v61, %v1471_v21  ;;  %v3326_v12 = vpack.c.bf16 %v2147_v5, %v2144_v31 }
 0x2c4   : > { %3435 = vst [vmem:[%s5208_s17 + $0x68] sm:$0xff] %v3171_v11   ;;  %3466 = vst [vmem:[%s5211_s10 + $0x68] sm:$0xff] %v3331_v45  }
 0x2c5   : > { %3434 = vst [vmem:[%s5208_s17 + $0x60] sm:$0xff] %v3166_v13   ;;  %3465 = vst [vmem:[%s5211_s10 + $0x60] sm:$0xff] %v3326_v12  }
 0x2c7   : > { %v3611_v48 = vpop.f32.mrb[28].mxu0  ;;  %v3691_v8 = vpop.f32.mrb[28].mxu1 }
 0x2c8   : > { %v1487_v62 = vpop.f32.mrb[29].mxu0  ;;  %v2160_v56 = vpop.f32.mrb[29].mxu1 }
 0x2c9   : > { %v3612_v14 = vpop.f32.mrb[30].mxu0  ;;  %v3692_v1 = vpop.f32.mrb[30].mxu1 }
 0x2ca   : > { %v3181_v47 = vpack.c.bf16 %v3612_v14, %v3611_v48  ;;  %v3341_v58 = vpack.c.bf16 %v3692_v1, %v3691_v8  ;;  %v1490_v41 = vpop.f32.mrb[31].mxu0  ;;  %v2163_v32 = vpop.f32.mrb[31].mxu1 }
 0x2cb   : > { %v3176_v40 = vpack.c.bf16 %v1490_v41, %v1487_v62  ;;  %v3336_v29 = vpack.c.bf16 %v2163_v32, %v2160_v56 }
 0x2cc   : > { %3437 = vst [vmem:[%s5208_s17 + $0x78] sm:$0xff] %v3181_v47   ;;  %3468 = vst [vmem:[%s5211_s10 + $0x78] sm:$0xff] %v3341_v58  }
 0x2cd   : > { %3436 = vst [vmem:[%s5208_s17 + $0x70] sm:$0xff] %v3176_v40   ;;  %3467 = vst [vmem:[%s5211_s10 + $0x70] sm:$0xff] %v3336_v29  }
 0x2cf   : > { %v3615_v26 = vpop.f32.mrb[32].mxu0  ;;  %v3695_v0 = vpop.f32.mrb[32].mxu1 }
 0x2d0   : > { %v1503_v16 = vpop.f32.mrb[33].mxu0  ;;  %v2176_v35 = vpop.f32.mrb[33].mxu1 }
 0x2d1   : > { %v3616_v23 = vpop.f32.mrb[34].mxu0  ;;  %v3696_v59 = vpop.f32.mrb[34].mxu1 }
 0x2d2   : > { %v3191_v38 = vpack.c.bf16 %v3616_v23, %v3615_v26  ;;  %v3351_v33 = vpack.c.bf16 %v3696_v59, %v3695_v0  ;;  %v1506_v4 = vpop.f32.mrb[35].mxu0  ;;  %v2179_v15 = vpop.f32.mrb[35].mxu1 }
 0x2d3   : > { %v3186_v28 = vpack.c.bf16 %v1506_v4, %v1503_v16  ;;  %v3346_v46 = vpack.c.bf16 %v2179_v15, %v2176_v35 }
 0x2d4   : > { %3439 = vst [vmem:[%s5208_s17 + $0x88] sm:$0xff] %v3191_v38   ;;  %3470 = vst [vmem:[%s5211_s10 + $0x88] sm:$0xff] %v3351_v33  }
 0x2d5   : > { %3438 = vst [vmem:[%s5208_s17 + $0x80] sm:$0xff] %v3186_v28   ;;  %3469 = vst [vmem:[%s5211_s10 + $0x80] sm:$0xff] %v3346_v46  }
 0x2d7   : > { %v3619_v19 = vpop.f32.mrb[36].mxu0  ;;  %v3699_v18 = vpop.f32.mrb[36].mxu1 }
 0x2d8   : > { %v1519_v9 = vpop.f32.mrb[37].mxu0  ;;  %v2192_v57 = vpop.f32.mrb[37].mxu1 }
 0x2d9   : > { %v3620_v22 = vpop.f32.mrb[38].mxu0  ;;  %v3700_v3 = vpop.f32.mrb[38].mxu1 }
 0x2da   : > { %v3201_v25 = vpack.c.bf16 %v3620_v22, %v3619_v19  ;;  %v3361_v60 = vpack.c.bf16 %v3700_v3, %v3699_v18  ;;  %v1522_v42 = vpop.f32.mrb[39].mxu0  ;;  %v2195_v6 = vpop.f32.mrb[39].mxu1 }
 0x2db   : > { %v3196_v52 = vpack.c.bf16 %v1522_v42, %v1519_v9  ;;  %v3356_v37 = vpack.c.bf16 %v2195_v6, %v2192_v57 }
 0x2dc   : > { %3441 = vst [vmem:[%s5208_s17 + $0x98] sm:$0xff] %v3201_v25   ;;  %3472 = vst [vmem:[%s5211_s10 + $0x98] sm:$0xff] %v3361_v60  }
 0x2dd   : > { %3440 = vst [vmem:[%s5208_s17 + $0x90] sm:$0xff] %v3196_v52   ;;  %3471 = vst [vmem:[%s5211_s10 + $0x90] sm:$0xff] %v3356_v37  }
 0x2df   : > { %v3623_v34 = vpop.f32.mrb[40].mxu0  ;;  %v3703_v39 = vpop.f32.mrb[40].mxu1 }
 0x2e0   : > { %v1535_v50 = vpop.f32.mrb[41].mxu0  ;;  %v2208_v49 = vpop.f32.mrb[41].mxu1 }
 0x2e1   : > { %v3624_v44 = vpop.f32.mrb[42].mxu0  ;;  %v3704_v43 = vpop.f32.mrb[42].mxu1 }
 0x2e2   : > { %v3211_v2 = vpack.c.bf16 %v3624_v44, %v3623_v34  ;;  %v3371_v17 = vpack.c.bf16 %v3704_v43, %v3703_v39  ;;  %v1538_v36 = vpop.f32.mrb[43].mxu0  ;;  %v2211_v10 = vpop.f32.mrb[43].mxu1 }
 0x2e3   : > { %v3206_v54 = vpack.c.bf16 %v1538_v36, %v1535_v50  ;;  %v3366_v63 = vpack.c.bf16 %v2211_v10, %v2208_v49 }
 0x2e4   : > { %3443 = vst [vmem:[%s5208_s17 + $0xa8] sm:$0xff] %v3211_v2   ;;  %3474 = vst [vmem:[%s5211_s10 + $0xa8] sm:$0xff] %v3371_v17  }
 0x2e5   : > { %3442 = vst [vmem:[%s5208_s17 + $0xa0] sm:$0xff] %v3206_v54   ;;  %3473 = vst [vmem:[%s5211_s10 + $0xa0] sm:$0xff] %v3366_v63  }
 0x2e7   : > { %v3627_v27 = vpop.f32.mrb[44].mxu0  ;;  %v3707_v7 = vpop.f32.mrb[44].mxu1 }
 0x2e8   : > { %v1551_v20 = vpop.f32.mrb[45].mxu0  ;;  %v2224_v24 = vpop.f32.mrb[45].mxu1 }
 0x2e9   : > { %v3628_v51 = vpop.f32.mrb[46].mxu0  ;;  %v3708_v53 = vpop.f32.mrb[46].mxu1 }
 0x2ea   : > { %v3221_v21 = vpack.c.bf16 %v3628_v51, %v3627_v27  ;;  %v3381_v31 = vpack.c.bf16 %v3708_v53, %v3707_v7  ;;  %v1554_v55 = vpop.f32.mrb[47].mxu0  ;;  %v2227_v30 = vpop.f32.mrb[47].mxu1 }
 0x2eb   : > { %v3216_v11 = vpack.c.bf16 %v1554_v55, %v1551_v20  ;;  %v3376_v45 = vpack.c.bf16 %v2227_v30, %v2224_v24 }
 0x2ec   : > { %3445 = vst [vmem:[%s5208_s17 + $0xb8] sm:$0xff] %v3221_v21   ;;  %3476 = vst [vmem:[%s5211_s10 + $0xb8] sm:$0xff] %v3381_v31  }
 0x2ed   : > { %3444 = vst [vmem:[%s5208_s17 + $0xb0] sm:$0xff] %v3216_v11   ;;  %3475 = vst [vmem:[%s5211_s10 + $0xb0] sm:$0xff] %v3376_v45  }
 0x2ef   : > { %v3631_v61 = vpop.f32.mrb[48].mxu0  ;;  %v3711_v5 = vpop.f32.mrb[48].mxu1 }
 0x2f0   : > { %v1567_v13 = vpop.f32.mrb[49].mxu0  ;;  %v2240_v12 = vpop.f32.mrb[49].mxu1 }
 0x2f1   : > { %v3632_v48 = vpop.f32.mrb[50].mxu0  ;;  %v3712_v8 = vpop.f32.mrb[50].mxu1 }
 0x2f2   : > { %v3231_v62 = vpack.c.bf16 %v3632_v48, %v3631_v61  ;;  %v3391_v56 = vpack.c.bf16 %v3712_v8, %v3711_v5  ;;  %v1570_v14 = vpop.f32.mrb[51].mxu0  ;;  %v2243_v1 = vpop.f32.mrb[51].mxu1 }
 0x2f3   : > { %v3226_v47 = vpack.c.bf16 %v1570_v14, %v1567_v13  ;;  %v3386_v58 = vpack.c.bf16 %v2243_v1, %v2240_v12 }
 0x2f4   : > { %3447 = vst [vmem:[%s5208_s17 + $0xc8] sm:$0xff] %v3231_v62   ;;  %3478 = vst [vmem:[%s5211_s10 + $0xc8] sm:$0xff] %v3391_v56  }
 0x2f5   : > { %3446 = vst [vmem:[%s5208_s17 + $0xc0] sm:$0xff] %v3226_v47   ;;  %3477 = vst [vmem:[%s5211_s10 + $0xc0] sm:$0xff] %v3386_v58  }
 0x2f7   : > { %v3635_v41 = vpop.f32.mrb[52].mxu0  ;;  %v3715_v32 = vpop.f32.mrb[52].mxu1 }
 0x2f8   : > { %v1583_v40 = vpop.f32.mrb[53].mxu0  ;;  %v2256_v29 = vpop.f32.mrb[53].mxu1 }
 0x2f9   : > { %v3636_v26 = vpop.f32.mrb[54].mxu0  ;;  %v3716_v0 = vpop.f32.mrb[54].mxu1 }
 0x2fa   : > { %v3241_v16 = vpack.c.bf16 %v3636_v26, %v3635_v41  ;;  %v3401_v35 = vpack.c.bf16 %v3716_v0, %v3715_v32  ;;  %v1586_v23 = vpop.f32.mrb[55].mxu0  ;;  %v2259_v59 = vpop.f32.mrb[55].mxu1 }
 0x2fb   : > { %v3236_v38 = vpack.c.bf16 %v1586_v23, %v1583_v40  ;;  %v3396_v33 = vpack.c.bf16 %v2259_v59, %v2256_v29 }
 0x2fc   : > { %3449 = vst [vmem:[%s5208_s17 + $0xd8] sm:$0xff] %v3241_v16   ;;  %3480 = vst [vmem:[%s5211_s10 + $0xd8] sm:$0xff] %v3401_v35  }
 0x2fd   : > { %3448 = vst [vmem:[%s5208_s17 + $0xd0] sm:$0xff] %v3236_v38   ;;  %3479 = vst [vmem:[%s5211_s10 + $0xd0] sm:$0xff] %v3396_v33  }
 0x2ff   : > { %v3639_v4 = vpop.f32.mrb[56].mxu0  ;;  %v3719_v15 = vpop.f32.mrb[56].mxu1 }
 0x300   : > { %v1599_v28 = vpop.f32.mrb[57].mxu0  ;;  %v2272_v46 = vpop.f32.mrb[57].mxu1 }
 0x301   : > { %v3640_v19 = vpop.f32.mrb[58].mxu0  ;;  %v3720_v18 = vpop.f32.mrb[58].mxu1 }
 0x302   : > { %v3251_v9 = vpack.c.bf16 %v3640_v19, %v3639_v4  ;;  %v3411_v57 = vpack.c.bf16 %v3720_v18, %v3719_v15  ;;  %v1602_v22 = vpop.f32.mrb[59].mxu0  ;;  %v2275_v3 = vpop.f32.mrb[59].mxu1 }
 0x303   : > { %v3246_v25 = vpack.c.bf16 %v1602_v22, %v1599_v28  ;;  %v3406_v60 = vpack.c.bf16 %v2275_v3, %v2272_v46 }
 0x304   : > { %3451 = vst [vmem:[%s5208_s17 + $0xe8] sm:$0xff] %v3251_v9   ;;  %3482 = vst [vmem:[%s5211_s10 + $0xe8] sm:$0xff] %v3411_v57  }
 0x305   : > { %3450 = vst [vmem:[%s5208_s17 + $0xe0] sm:$0xff] %v3246_v25   ;;  %3481 = vst [vmem:[%s5211_s10 + $0xe0] sm:$0xff] %v3406_v60  }
 0x34b   : > { %v3643_v42 = vpop.f32.mrb[60].mxu0  ;;  %v3723_v6 = vpop.f32.mrb[60].mxu1 }
 0x34c   : > { %v1615_v52 = vpop.f32.mrb[61].mxu0  ;;  %v2288_v37 = vpop.f32.mrb[61].mxu1 }
 0x34d   : > { %v3644_v34 = vpop.f32.mrb[62].mxu0  ;;  %v3724_v39 = vpop.f32.mrb[62].mxu1 }
 0x34e   : > { %v3261_v50 = vpack.c.bf16 %v3644_v34, %v3643_v42  ;;  %v3421_v49 = vpack.c.bf16 %v3724_v39, %v3723_v6  ;;  %v1618_v44 = vpop.f32.mrb[63].mxu0  ;;  %v2291_v43 = vpop.f32.mrb[63].mxu1 }
 0x34f   : > { %v3256_v2 = vpack.c.bf16 %v1618_v44, %v1615_v52  ;;  %v3416_v17 = vpack.c.bf16 %v2291_v43, %v2288_v37 }
 0x350   : > { %3453 = vst [vmem:[%s5208_s17 + $0xf8] sm:$0xff] %v3261_v50   ;;  %3484 = vst [vmem:[%s5211_s10 + $0xf8] sm:$0xff] %v3421_v49  }
 0x351   : > { %3452 = vst [vmem:[%s5208_s17 + $0xf0] sm:$0xff] %v3256_v2   ;;  %3483 = vst [vmem:[%s5211_s10 + $0xf0] sm:$0xff] %v3416_v17  }
 0x352   : > { %4064 = shalt.err (!%p4061_p11)
}
 0x353   : > { %s4065_s17 = scalar_lea.hbm %s5277_s7, 4096  ;;  %s4069_s29 = scalar_lea.hbm %s5375_s5, 8192 }
 0x354   : > { %p4066_p0 = scmp.ne.s32.totalorder %s5277_s7, %s4065_s17  ;;  %p4070_p6 = scmp.lt.u32.totalorder %s5277_s7, %s5375_s5 }
 0x355   : > { %p4071_p7 = scmp.lt.u32.totalorder %s4069_s29, %s4065_s17  ;;  %p4073_p8 = scmp.lt.u32.totalorder %s4065_s17, %s5277_s7 }
 0x356   : > { %p4067_p4 = pnand %p4066_p0, %p5486_p12 }
 0x357   : > { %p4072_p2 = por %p4071_p7, %p4070_p6 }
 0x358   : > { %p4068_p13 = pneg %p4067_p4 }
 0x359   : > { %p4074_p1 = por %p4073_p8, %p4072_p2 }
 0x35b   : > { %p4075_p10 = pnand %p4074_p1, %p4068_p13 }
 0x35d   : > { %4078 = shalt.err (!%p4075_p10)
}
 0x35e   : > { %s4179_s15 = smov 64   ;;  %s4180_s18 = smov 4  }
 0x35f   : > { %3735 = dma.vmem_to_hbm [thread:$0]  (%p5486_p12), %s5280_s19, 4096, %s5277_s7, %s2624_s8, %s4179_s15, %s4179_s15, %s4180_s18  }
 0x360   : > { %s2629_s14 = scalar_lea.sflag [#allocation10], %s4405_s20  ;;  %s4079_s30 = scalar_lea.vmem %s5289_s9, 4096 }
 0x361   : > { %p4080_p3 = scmp.ne.s32.totalorder %s5289_s9, %s4079_s30  ;;  %s4181_s17 = smov [#allocation9]  }
 0x362   : > { %s4083_s10 = sshll.u32 %s4181_s17, 4  ;;  %s4084_s10 = int_to_ptr.vmem [resolvable:$false] %s4083_s10 }
 0x363   : > { %p4081_p5 = pnand %p4080_p3, %p5486_p12  ;;  %s4085_s27 = scalar_lea.vmem %s4084_s10, 8192 }
 0x364   : > { %p4086_p11 = scmp.lt.s32.totalorder %s5289_s9, %s4084_s10  ;;  %p4087_p0 = scmp.lt.s32.totalorder %s4085_s27, %s4079_s30 }
 0x365   : > { %p4082_p9 = pneg %p4081_p5 }
 0x366   : > { %p4088_p4 = por %p4087_p0, %p4086_p11 }
 0x368   : > { %p4089_p13 = pnand %p4088_p4, %p4082_p9 }
 0x36a   : > { %4092 = shalt.err (!%p4089_p13)
}
 0x36b   : > { %s4093_s19 = scalar_lea.hbm %s5287_s11, 4096  ;;  %s4097_s29 = scalar_lea.hbm %s5376_s6, 8192 }
 0x36c   : > { %p4094_p6 = scmp.ne.s32.totalorder %s5287_s11, %s4093_s19  ;;  %p4098_p8 = scmp.lt.u32.totalorder %s5287_s11, %s5376_s6 }
 0x36d   : > { %p4099_p1 = scmp.lt.u32.totalorder %s4097_s29, %s4093_s19  ;;  %p4101_p3 = scmp.lt.u32.totalorder %s4093_s19, %s5287_s11 }
 0x36e   : > { %p4095_p7 = pnand %p4094_p6, %p5486_p12 }
 0x36f   : > { %p4100_p10 = por %p4099_p1, %p4098_p8 }
 0x370   : > { %p4096_p2 = pneg %p4095_p7 }
 0x371   : > { %p4102_p5 = por %p4101_p3, %p4100_p10 }
 0x373   : > { %p4103_p9 = pnand %p4102_p5, %p4096_p2 }
 0x375   : > { %4106 = shalt.err (!%p4103_p9)
}
 0x376   : > { %3736 = dma.vmem_to_hbm [thread:$0]  (%p5486_p12), %s5289_s9, 4096, %s5287_s11, %s2629_s14, %s4179_s15, %s4179_s15, %s4180_s18  }
 0x377 PF: > { %s5487_s30 = sld [smem:[#allocation15_spill]]  ;;  %s2677_s17 = sand.u32 1, %s4149_s21  }
 0x378   : > { %p5489_p0 = scmp.ge.s32.totalorder %s4169_s26, 2  ;;  %s2678_s10 = scalar_lea.sflag [#allocation4], %s2677_s17 }
 0x37d   : > { %p5488_p11 = scmp.ne.s32.totalorder %s5487_s30, 0 }
 0x37f   : > { %p3751_p4 = pnand %p5489_p0, %p5488_p11 }
 0x381   : > { %4140 = dma.done.wait (!%p3751_p4), %s2678_s10, 4096  }
 0x382   : > { %4142 = vsyncadd (!%p3751_p4), %s2678_s10, 4294963200  ;;  %s2687_s12 = scalar_lea.sflag [#allocation10], %s2677_s17 }
 0x383   : > { %4144 = dma.done.wait (!%p3751_p4), %s2687_s12, 4096  }
 0x384   : > { %4146 = vsyncadd (!%p3751_p4), %s2687_s12, 4294963200  ;;  %s27_s26 = sadd.s32 1, %s4169_s26   ;;  %s5490_s21 = smov %s4153_s22 }
 0x385   : > { %p24_p13 = scmp.ge.s32.totalorder %s27_s26, 4   ;;  %s5491_s22 = smov %s4157_s23 }
 0x386   : > { %s5492_s23 = smov %s4359_s13  ;;  %s5493_s24 = smov %s4165_s25 }
 0x387   : > { %s5494_s25 = smov %s5496_s16  ;;  %26 = sbr.rel (!%p24_p13) target bundleno = 9 (0x9), region = 110 }
 0x38e   :  { %2692 = vsyncpa [#allocation3], 1 }
 0x38f   :  { %2694 = vsyncpa [#allocation3 + $0x1], 1 }
 0x390   :  { %2695 = vsyncpa [#allocation6], 1 }
 0x391   :  { %2696 = vsyncpa [#allocation4], 1 }
 0x392   :  { %2698 = vsyncpa [#allocation4 + $0x1], 1 }
 0x393   :  { %2699 = vsyncpa [#allocation10], 1 }
 0x394   :  { %2701 = vsyncpa [#allocation10 + $0x1], 1 }

</bundles_post_ra>
